<compile_context>
chip_gen: v7x
topology: tpu7x:2x2x1
jax: 0.10.0
libtpu: 0.0.40
codegen_flags: <defaults>
</compile_context>

<pallas_src>
import functools
from typing import NamedTuple

import jax
import jax.numpy as jnp
import numpy as np
from jax import lax
from jax.experimental import pallas as pl
from jax.experimental.pallas import tpu as pltpu


def _round_up(n, m):
    return ((n + m - 1) // m) * m


def _sigmoid(x):
    # sigmoid(x) = 0.5 * tanh(0.5 * x) + 0.5  -- single EUP op, no VALU divide.
    return 0.5 * jnp.tanh(0.5 * x) + 0.5


def _char_decoder_kernel(ids_ref, h0_ref, c0_ref, ew_ref, whh_ref, b_ref,
                         wout_ref, bout_ref,
                         scores_ref, hT_ref, cT_ref,
                         gx_scr, h_scr, *, seq_len, batch_tile, gate_pitch):
    L, Bt, GP = seq_len, batch_tile, gate_pitch
    Vp = ew_ref.shape[0]

    # ---- Fused embedding gather + input projection (hoisted, one matmul) ---
    # one_hot[(t,b), v] = [ids[t,b] == v];   ew = emb @ W_ih^T (pre-fused).
    ids = ids_ref[...]                                              # (L, Bt, 1)
    onehot = jnp.where(
        ids == lax.broadcasted_iota(jnp.int32, (L, Bt, Vp), 2), 1.0, 0.0)
    gx_scr[...] = (jnp.dot(onehot.reshape(L * Bt, Vp), ew_ref[...],
                           preferred_element_type=jnp.float32)
                   + b_ref[...])                                    # (L*Bt, 4GP)

    h = h0_ref[...]                                                 # (Bt, GP)
    c = c0_ref[...]                                                 # (Bt, GP)

    # ---- Serial LSTM recurrence (static unroll; L is small) ---------------
    # TODO(synk): pin W_hh in the MXU weight registers across the unrolled loop
    # (pltpu.matmul_push_rhs / matmul_acc_lhs) to shave per-step weight pushes.
    for t in range(L):
        gates = (gx_scr[t * Bt:(t + 1) * Bt, :]
                 + jnp.dot(h, whh_ref[...], preferred_element_type=jnp.float32))
        # GP is a multiple of 128 -> every gate slice is whole-vreg aligned.
        i_g = _sigmoid(gates[:, 0 * GP:1 * GP])
        f_g = _sigmoid(gates[:, 1 * GP:2 * GP])
        g_g = jnp.tanh(gates[:, 2 * GP:3 * GP])
        o_g = _sigmoid(gates[:, 3 * GP:4 * GP])
        c = f_g * c + i_g * g_g
        h = o_g * jnp.tanh(c)
        h_scr[t * Bt:(t + 1) * Bt, :] = h        # static-offset scratch write

    # Final LSTM state: written once, lane-dense (GP multiple of 128).
    hT_ref[...] = h
    cT_ref[...] = c

    # ---- Output projection hoisted out of the loop (one matmul) ------------
    scores = (jnp.dot(h_scr[...], wout_ref[...],
                      preferred_element_type=jnp.float32) + bout_ref[...])
    scores_ref[...] = scores.reshape(L, Bt, Vp)


class _Dims(NamedTuple):
    V: int
    H: int
    GP: int
    Vp: int


def prepare_params(params):
    """One-time weight preprocessing, hoisted out of the per-call path."""
    V, E = params['emb'].shape
    H = params['w_hh'].shape[1]
    GP = _round_up(H, 128)            # per-gate lane pitch (vreg aligned)
    Vp = _round_up(V, 128)            # lane-dense vocab

    def gate_pad(m):                  # (..., 4H) -> (..., 4*GP), per-gate pad
        m4 = m.reshape(m.shape[:-1] + (4, H))
        pad = [(0, 0)] * (m4.ndim - 1) + [(0, GP - H)]
        return jnp.pad(m4, pad).reshape(m.shape[:-1] + (4 * GP,))

    # Fuse Embedding with the input projection: (V, E) @ (E, 4H) -> (V, 4H).
    emb_wih = jnp.dot(params['emb'], params['w_ih'].T,
                      precision=lax.Precision.HIGHEST)
    ew = jnp.pad(gate_pad(emb_wih), ((0, Vp - V), (0, 0)))              # (Vp,4GP)
    whh = jnp.pad(gate_pad(params['w_hh'].T), ((0, GP - H), (0, 0)))    # (GP,4GP)
    b = gate_pad((params['b_ih'] + params['b_hh']).reshape(1, 4 * H))   # (1,4GP)
    wout = jnp.pad(params['w_out'].T, ((0, GP - H), (0, Vp - V)))       # (GP,Vp)
    bout = jnp.pad(params['b_out'], (0, Vp - V)).reshape(1, Vp)         # (1,Vp)

    prep = {'ew': ew, 'whh': whh, 'b': b, 'wout': wout, 'bout': bout}
    return prep, _Dims(V=V, H=H, GP=GP, Vp=Vp)


def char_decoder_forward(input_ids, prep, dec_hidden=None, *, dims,
                         batch_tile=None):
    """Pallas implementation of CharDecoder.forward.

    input_ids : int (L, B)
    prep, dims: output of prepare_params(params)
    dec_hidden: optional tuple of (1, B, H) tensors
    Returns   : scores (L, B, V), (h_n, c_n) each (1, B, H)
    """
    L, B = input_ids.shape
    V, H, GP, Vp = dims.V, dims.H, dims.GP, dims.Vp

    # Batch tiling: one grid step per batch tile; "parallel" lets megacore
    # split it and bounds per-block VMEM on v7x at production batch sizes.
    if batch_tile is None:
        batch_tile = 128
    Bt = min(_round_up(batch_tile, 8), _round_up(B, 8))
    Bp = _round_up(B, Bt)
    nb = Bp // Bt

    ids = jnp.pad(input_ids.astype(jnp.int32), ((0, 0), (0, Bp - B)))[..., None]

    if dec_hidden is None:
        h0 = jnp.zeros((Bp, GP), jnp.float32)
        c0 = jnp.zeros((Bp, GP), jnp.float32)
    else:
        h0 = jnp.pad(dec_hidden[0][0], ((0, Bp - B), (0, GP - H)))
        c0 = jnp.pad(dec_hidden[1][0], ((0, Bp - B), (0, GP - H)))

    kernel = functools.partial(_char_decoder_kernel, seq_len=L,
                               batch_tile=Bt, gate_pitch=GP)

    scores_p, hT_p, cT_p = pl.pallas_call(
        kernel,
        out_shape=(
            jax.ShapeDtypeStruct((L, Bp, Vp), jnp.float32),   # scores (padded)
            jax.ShapeDtypeStruct((Bp, GP), jnp.float32),      # h_n (padded)
            jax.ShapeDtypeStruct((Bp, GP), jnp.float32),      # c_n (padded)
        ),
        grid_spec=pltpu.PrefetchScalarGridSpec(
            num_scalar_prefetch=0,
            grid=(nb,),
            in_specs=[
                pl.BlockSpec((L, Bt, 1), lambda b: (0, b, 0)),       # ids
                pl.BlockSpec((Bt, GP), lambda b: (b, 0)),            # h0
                pl.BlockSpec((Bt, GP), lambda b: (b, 0)),            # c0
                pl.BlockSpec((Vp, 4 * GP), lambda b: (0, 0)),        # emb @ W_ih^T
                pl.BlockSpec((GP, 4 * GP), lambda b: (0, 0)),        # W_hh^T
                pl.BlockSpec((1, 4 * GP), lambda b: (0, 0)),         # b_ih + b_hh
                pl.BlockSpec((GP, Vp), lambda b: (0, 0)),            # W_out^T
                pl.BlockSpec((1, Vp), lambda b: (0, 0)),             # b_out
            ],
            out_specs=[
                pl.BlockSpec((L, Bt, Vp), lambda b: (0, b, 0)),      # scores
                pl.BlockSpec((Bt, GP), lambda b: (b, 0)),            # h_n
                pl.BlockSpec((Bt, GP), lambda b: (b, 0)),            # c_n
            ],
            scratch_shapes=[
                pltpu.VMEM((L * Bt, 4 * GP), jnp.float32),           # gates_x
                pltpu.VMEM((L * Bt, GP), jnp.float32),               # stacked h_t
            ]),
        compiler_params=pltpu.CompilerParams(
            dimension_semantics=("parallel",)),
    )(ids, h0, c0, prep['ew'], prep['whh'], prep['b'],
      prep['wout'], prep['bout'])

    # Slice padding back off (kept for module-faithful return shapes).
    scores = scores_p[:, :B, :V]
    h_n = hT_p[:B, :H][None]
    c_n = cT_p[:B, :H][None]
    return scores, (h_n, c_n)


def char_decoder_forward_ref(input_ids, params, dec_hidden=None):
    """Pure-JAX reference (matches PyTorch nn.LSTM cell equations)."""
    L, B = input_ids.shape
    H = params['w_hh'].shape[1]
    x = jnp.take(params['emb'], input_ids, axis=0)
    if dec_hidden is None:
        h0 = jnp.zeros((B, H), jnp.float32)
        c0 = jnp.zeros((B, H), jnp.float32)
    else:
        h0, c0 = dec_hidden[0][0], dec_hidden[1][0]

    w_ih_t = params['w_ih'].T
    w_hh_t = params['w_hh'].T
    b = params['b_ih'] + params['b_hh']

    def step(carry, x_t):
        h, c = carry
        gates = x_t @ w_ih_t + h @ w_hh_t + b
        i = jax.nn.sigmoid(gates[:, 0 * H:1 * H])
        f = jax.nn.sigmoid(gates[:, 1 * H:2 * H])
        g = jnp.tanh(gates[:, 2 * H:3 * H])
        o = jax.nn.sigmoid(gates[:, 3 * H:4 * H])
        c = f * c + i * g
        h = o * jnp.tanh(c)
        return (h, c), h

    (hT, cT), outs = lax.scan(step, (h0, c0), x)
    scores = outs @ params['w_out'].T + params['b_out']
    return scores, (hT[None], cT[None])


def make_params(key, vocab_size, char_emb_size, hidden_size, pad_idx):
    ks = jax.random.split(key, 7)
    scale = 1.0 / np.sqrt(hidden_size)
    emb = jax.random.normal(ks[0], (vocab_size, char_emb_size), jnp.float32)
    emb = emb.at[pad_idx].set(0.0)   # nn.Embedding padding_idx row is zero
    return {
        'emb': emb,
        'w_ih': jax.random.uniform(ks[1], (4 * hidden_size, char_emb_size),
                                   jnp.float32, -scale, scale),
        'w_hh': jax.random.uniform(ks[2], (4 * hidden_size, hidden_size),
                                   jnp.float32, -scale, scale),
        'b_ih': jax.random.uniform(ks[3], (4 * hidden_size,),
                                   jnp.float32, -scale, scale),
        'b_hh': jax.random.uniform(ks[4], (4 * hidden_size,),
                                   jnp.float32, -scale, scale),
        'w_out': jax.random.uniform(ks[5], (vocab_size, hidden_size),
                                    jnp.float32, -scale, scale),
        'b_out': jax.random.uniform(ks[6], (vocab_size,),
                                    jnp.float32, -scale, scale),
    }


if __name__ == "__main__":
    LENGTH = 8
    BATCH = 4
    HIDDEN = 32
    CHAR_EMB = 50          # module default char_embedding_size
    VOCAB = 30             # len(target_vocab.char2id)
    PAD_IDX = 0            # target_vocab.char_pad

    key = jax.random.PRNGKey(0)
    k_par, k_inp, k_h, k_c = jax.random.split(key, 4)

    params = make_params(k_par, VOCAB, CHAR_EMB, HIDDEN, PAD_IDX)
    input_ids = jax.random.randint(k_inp, (LENGTH, BATCH), 0, VOCAB, jnp.int32)
    dec_hidden = (
        jax.random.normal(k_h, (1, BATCH, HIDDEN), jnp.float32),
        jax.random.normal(k_c, (1, BATCH, HIDDEN), jnp.float32),
    )

    # One-time weight prep (hoisted out of the forward path), then jit the
    # whole forward so the remaining wrapper glue fuses around the kernel.
    prep, dims = prepare_params(params)
    fwd = jax.jit(functools.partial(char_decoder_forward, dims=dims))

    scores, (h_n, c_n) = fwd(input_ids, prep, dec_hidden)
    jax.block_until_ready((scores, h_n, c_n))

    scores_ref, (h_ref, c_ref) = char_decoder_forward_ref(
        input_ids, params, dec_hidden)

    np.testing.assert_allclose(np.asarray(scores), np.asarray(scores_ref),
                               rtol=1e-4, atol=1e-4)
    np.testing.assert_allclose(np.asarray(h_n), np.asarray(h_ref),
                               rtol=1e-4, atol=1e-4)
    np.testing.assert_allclose(np.asarray(c_n), np.asarray(c_ref),
                               rtol=1e-4, atol=1e-4)

    assert scores.shape == (LENGTH, BATCH, VOCAB)
    assert h_n.shape == (1, BATCH, HIDDEN) and c_n.shape == (1, BATCH, HIDDEN)
    print("KERNEL_OK")
</pallas_src>

<mosaic_0001>
module attributes {stable_mosaic.version = 11 : i64} {
  func.func @_char_decoder_kernel(%arg0: i32, %arg1: memref<8x8x1xi32, #tpu.memory_space<vmem>>, %arg2: memref<8x128xf32, #tpu.memory_space<vmem>>, %arg3: memref<8x128xf32, #tpu.memory_space<vmem>>, %arg4: memref<128x512xf32, #tpu.memory_space<vmem>>, %arg5: memref<128x512xf32, #tpu.memory_space<vmem>>, %arg6: memref<1x512xf32, #tpu.memory_space<vmem>>, %arg7: memref<128x128xf32, #tpu.memory_space<vmem>>, %arg8: memref<1x128xf32, #tpu.memory_space<vmem>>, %arg9: memref<8x8x128xf32, #tpu.memory_space<vmem>>, %arg10: memref<8x128xf32, #tpu.memory_space<vmem>>, %arg11: memref<8x128xf32, #tpu.memory_space<vmem>>, %arg12: memref<64x512xf32, #tpu.memory_space<vmem>>, %arg13: memref<64x128xf32, #tpu.memory_space<vmem>>) attributes {dimension_semantics = [#tpu.dimension_semantics<parallel>], iteration_bounds = array<i64: 1>, scalar_prefetch = 0 : i64, scratch_operands = 2 : i64, tpu.core_type = #tpu.core_type<tc>, window_params = [{transform_indices = @transform_0, window_bounds = array<i64: 8, 8, 1>}, {transform_indices = @transform_1, window_bounds = array<i64: 8, 128>}, {transform_indices = @transform_2, window_bounds = array<i64: 8, 128>}, {pipeline_mode = #tpu.pipeline_mode<synchronous>, transform_indices = @transform_3, window_bounds = array<i64: 128, 512>}, {pipeline_mode = #tpu.pipeline_mode<synchronous>, transform_indices = @transform_4, window_bounds = array<i64: 128, 512>}, {pipeline_mode = #tpu.pipeline_mode<synchronous>, transform_indices = @transform_5, window_bounds = array<i64: 1, 512>}, {pipeline_mode = #tpu.pipeline_mode<synchronous>, transform_indices = @transform_6, window_bounds = array<i64: 128, 128>}, {pipeline_mode = #tpu.pipeline_mode<synchronous>, transform_indices = @transform_7, window_bounds = array<i64: 1, 128>}, {transform_indices = @transform_8, window_bounds = array<i64: 8, 8, 128>}, {transform_indices = @transform_9, window_bounds = array<i64: 8, 128>}, {transform_indices = @transform_10, window_bounds = array<i64: 8, 128>}]} {
    %c0 = arith.constant 0 : index
    %c0_0 = arith.constant 0 : index
    %c0_1 = arith.constant 0 : index
    %0 = vector.load %arg1[%c0, %c0_0, %c0_1] : memref<8x8x1xi32, #tpu.memory_space<vmem>>, vector<8x8x1xi32>
    %1 = tpu.iota {dimensions = array<i32: 2>} : vector<8x8x128xi32>
    %2 = vector.broadcast %0 : vector<8x8x1xi32> to vector<8x8x128xi32>
    %3 = arith.cmpi eq, %2, %1 : vector<8x8x128xi32>
    %cst = arith.constant 1.000000e+00 : f32
    %cst_2 = arith.constant 0.000000e+00 : f32
    %4 = vector.broadcast %cst : f32 to vector<8x8x128xf32>
    %5 = vector.broadcast %cst_2 : f32 to vector<8x8x128xf32>
    %6 = arith.select %3, %4, %5 : vector<8x8x128xi1>, vector<8x8x128xf32>
    %7 = vector.shape_cast %6 : vector<8x8x128xf32> to vector<64x128xf32>
    %c0_3 = arith.constant 0 : index
    %c0_4 = arith.constant 0 : index
    %8 = vector.load %arg4[%c0_3, %c0_4] : memref<128x512xf32, #tpu.memory_space<vmem>>, vector<128x512xf32>
    %cst_5 = arith.constant dense<0.000000e+00> : vector<64x512xf32>
    %9 = tpu.matmul %7, %8, %cst_5 {dimension_numbers = #tpu.dot_dimension_numbers<[1], [0], [0], [1], [0, 0, 1, 1], [], []>} : vector<64x128xf32>, vector<128x512xf32>, vector<64x512xf32> -> vector<64x512xf32>
    %c0_6 = arith.constant 0 : index
    %c0_7 = arith.constant 0 : index
    %10 = vector.load %arg6[%c0_6, %c0_7] : memref<1x512xf32, #tpu.memory_space<vmem>>, vector<1x512xf32>
    %11 = vector.broadcast %10 : vector<1x512xf32> to vector<64x512xf32>
    %12 = arith.addf %9, %11 : vector<64x512xf32>
    %c0_8 = arith.constant 0 : index
    %c0_9 = arith.constant 0 : index
    %13 = vector.load %arg12[%c0_8, %c0_9] : memref<64x512xf32, #tpu.memory_space<vmem>>, vector<64x512xf32>
    tpu.vector_store %arg12[%c0_8, %c0_9], %12 {strides = array<i32>} : memref<64x512xf32, #tpu.memory_space<vmem>>, vector<64x512xf32>,
    %c0_10 = arith.constant 0 : index
    %c0_11 = arith.constant 0 : index
    %14 = vector.load %arg2[%c0_10, %c0_11] : memref<8x128xf32, #tpu.memory_space<vmem>>, vector<8x128xf32>
    %c0_12 = arith.constant 0 : index
    %c0_13 = arith.constant 0 : index
    %15 = vector.load %arg3[%c0_12, %c0_13] : memref<8x128xf32, #tpu.memory_space<vmem>>, vector<8x128xf32>
    %c0_14 = arith.constant 0 : index
    %c0_15 = arith.constant 0 : index
    %16 = vector.load %arg12[%c0_14, %c0_15] : memref<64x512xf32, #tpu.memory_space<vmem>>, vector<8x512xf32>
    %c0_16 = arith.constant 0 : index
    %c0_17 = arith.constant 0 : index
    %17 = vector.load %arg5[%c0_16, %c0_17] : memref<128x512xf32, #tpu.memory_space<vmem>>, vector<128x512xf32>
    %cst_18 = arith.constant dense<0.000000e+00> : vector<8x512xf32>
    %18 = tpu.matmul %14, %17, %cst_18 {dimension_numbers = #tpu.dot_dimension_numbers<[1], [0], [0], [1], [0, 0, 1, 1], [], []>} : vector<8x128xf32>, vector<128x512xf32>, vector<8x512xf32> -> vector<8x512xf32>
    %19 = arith.addf %16, %18 : vector<8x512xf32>
    %20 = vector.extract_strided_slice %19 {offsets = [0, 0], sizes = [8, 128], strides = [1, 1]} : vector<8x512xf32> to vector<8x128xf32>
    %cst_19 = arith.constant 5.000000e-01 : f32
    %21 = vector.broadcast %cst_19 : f32 to vector<8x128xf32>
    %22 = arith.mulf %21, %20 : vector<8x128xf32>
    %23 = math.tanh %22 : vector<8x128xf32>
    %cst_20 = arith.constant 5.000000e-01 : f32
    %24 = vector.broadcast %cst_20 : f32 to vector<8x128xf32>
    %25 = arith.mulf %24, %23 : vector<8x128xf32>
    %cst_21 = arith.constant 5.000000e-01 : f32
    %26 = vector.broadcast %cst_21 : f32 to vector<8x128xf32>
    %27 = arith.addf %25, %26 : vector<8x128xf32>
    %28 = vector.extract_strided_slice %19 {offsets = [0, 128], sizes = [8, 128], strides = [1, 1]} : vector<8x512xf32> to vector<8x128xf32>
    %cst_22 = arith.constant 5.000000e-01 : f32
    %29 = vector.broadcast %cst_22 : f32 to vector<8x128xf32>
    %30 = arith.mulf %29, %28 : vector<8x128xf32>
    %31 = math.tanh %30 : vector<8x128xf32>
    %cst_23 = arith.constant 5.000000e-01 : f32
    %32 = vector.broadcast %cst_23 : f32 to vector<8x128xf32>
    %33 = arith.mulf %32, %31 : vector<8x128xf32>
    %cst_24 = arith.constant 5.000000e-01 : f32
    %34 = vector.broadcast %cst_24 : f32 to vector<8x128xf32>
    %35 = arith.addf %33, %34 : vector<8x128xf32>
    %36 = vector.extract_strided_slice %19 {offsets = [0, 256], sizes = [8, 128], strides = [1, 1]} : vector<8x512xf32> to vector<8x128xf32>
    %37 = math.tanh %36 : vector<8x128xf32>
    %38 = vector.extract_strided_slice %19 {offsets = [0, 384], sizes = [8, 128], strides = [1, 1]} : vector<8x512xf32> to vector<8x128xf32>
    %cst_25 = arith.constant 5.000000e-01 : f32
    %39 = vector.broadcast %cst_25 : f32 to vector<8x128xf32>
    %40 = arith.mulf %39, %38 : vector<8x128xf32>
    %41 = math.tanh %40 : vector<8x128xf32>
    %cst_26 = arith.constant 5.000000e-01 : f32
    %42 = vector.broadcast %cst_26 : f32 to vector<8x128xf32>
    %43 = arith.mulf %42, %41 : vector<8x128xf32>
    %cst_27 = arith.constant 5.000000e-01 : f32
    %44 = vector.broadcast %cst_27 : f32 to vector<8x128xf32>
    %45 = arith.addf %43, %44 : vector<8x128xf32>
    %46 = arith.mulf %35, %15 : vector<8x128xf32>
    %47 = arith.mulf %27, %37 : vector<8x128xf32>
    %48 = arith.addf %46, %47 : vector<8x128xf32>
    %49 = math.tanh %48 : vector<8x128xf32>
    %50 = arith.mulf %45, %49 : vector<8x128xf32>
    %c0_28 = arith.constant 0 : index
    %c0_29 = arith.constant 0 : index
    %51 = vector.load %arg13[%c0_28, %c0_29] : memref<64x128xf32, #tpu.memory_space<vmem>>, vector<8x128xf32>
    tpu.vector_store %arg13[%c0_28, %c0_29], %50 {strides = array<i32>} : memref<64x128xf32, #tpu.memory_space<vmem>>, vector<8x128xf32>,
    %c8 = arith.constant 8 : index
    %c0_30 = arith.constant 0 : index
    %52 = vector.load %arg12[%c8, %c0_30] : memref<64x512xf32, #tpu.memory_space<vmem>>, vector<8x512xf32>
    %c0_31 = arith.constant 0 : index
    %c0_32 = arith.constant 0 : index
    %53 = vector.load %arg5[%c0_31, %c0_32] : memref<128x512xf32, #tpu.memory_space<vmem>>, vector<128x512xf32>
    %cst_33 = arith.constant dense<0.000000e+00> : vector<8x512xf32>
    %54 = tpu.matmul %50, %53, %cst_33 {dimension_numbers = #tpu.dot_dimension_numbers<[1], [0], [0], [1], [0, 0, 1, 1], [], []>} : vector<8x128xf32>, vector<128x512xf32>, vector<8x512xf32> -> vector<8x512xf32>
    %55 = arith.addf %52, %54 : vector<8x512xf32>
    %56 = vector.extract_strided_slice %55 {offsets = [0, 0], sizes = [8, 128], strides = [1, 1]} : vector<8x512xf32> to vector<8x128xf32>
    %cst_34 = arith.constant 5.000000e-01 : f32
    %57 = vector.broadcast %cst_34 : f32 to vector<8x128xf32>
    %58 = arith.mulf %57, %56 : vector<8x128xf32>
    %59 = math.tanh %58 : vector<8x128xf32>
    %cst_35 = arith.constant 5.000000e-01 : f32
    %60 = vector.broadcast %cst_35 : f32 to vector<8x128xf32>
    %61 = arith.mulf %60, %59 : vector<8x128xf32>
    %cst_36 = arith.constant 5.000000e-01 : f32
    %62 = vector.broadcast %cst_36 : f32 to vector<8x128xf32>
    %63 = arith.addf %61, %62 : vector<8x128xf32>
    %64 = vector.extract_strided_slice %55 {offsets = [0, 128], sizes = [8, 128], strides = [1, 1]} : vector<8x512xf32> to vector<8x128xf32>
    %cst_37 = arith.constant 5.000000e-01 : f32
    %65 = vector.broadcast %cst_37 : f32 to vector<8x128xf32>
    %66 = arith.mulf %65, %64 : vector<8x128xf32>
    %67 = math.tanh %66 : vector<8x128xf32>
    %cst_38 = arith.constant 5.000000e-01 : f32
    %68 = vector.broadcast %cst_38 : f32 to vector<8x128xf32>
    %69 = arith.mulf %68, %67 : vector<8x128xf32>
    %cst_39 = arith.constant 5.000000e-01 : f32
    %70 = vector.broadcast %cst_39 : f32 to vector<8x128xf32>
    %71 = arith.addf %69, %70 : vector<8x128xf32>
    %72 = vector.extract_strided_slice %55 {offsets = [0, 256], sizes = [8, 128], strides = [1, 1]} : vector<8x512xf32> to vector<8x128xf32>
    %73 = math.tanh %72 : vector<8x128xf32>
    %74 = vector.extract_strided_slice %55 {offsets = [0, 384], sizes = [8, 128], strides = [1, 1]} : vector<8x512xf32> to vector<8x128xf32>
    %cst_40 = arith.constant 5.000000e-01 : f32
    %75 = vector.broadcast %cst_40 : f32 to vector<8x128xf32>
    %76 = arith.mulf %75, %74 : vector<8x128xf32>
    %77 = math.tanh %76 : vector<8x128xf32>
    %cst_41 = arith.constant 5.000000e-01 : f32
    %78 = vector.broadcast %cst_41 : f32 to vector<8x128xf32>
    %79 = arith.mulf %78, %77 : vector<8x128xf32>
    %cst_42 = arith.constant 5.000000e-01 : f32
    %80 = vector.broadcast %cst_42 : f32 to vector<8x128xf32>
    %81 = arith.addf %79, %80 : vector<8x128xf32>
    %82 = arith.mulf %71, %48 : vector<8x128xf32>
    %83 = arith.mulf %63, %73 : vector<8x128xf32>
    %84 = arith.addf %82, %83 : vector<8x128xf32>
    %85 = math.tanh %84 : vector<8x128xf32>
    %86 = arith.mulf %81, %85 : vector<8x128xf32>
    %c8_43 = arith.constant 8 : index
    %c0_44 = arith.constant 0 : index
    %87 = vector.load %arg13[%c8_43, %c0_44] : memref<64x128xf32, #tpu.memory_space<vmem>>, vector<8x128xf32>
    tpu.vector_store %arg13[%c8_43, %c0_44], %86 {strides = array<i32>} : memref<64x128xf32, #tpu.memory_space<vmem>>, vector<8x128xf32>,
    %c16 = arith.constant 16 : index
    %c0_45 = arith.constant 0 : index
    %88 = vector.load %arg12[%c16, %c0_45] : memref<64x512xf32, #tpu.memory_space<vmem>>, vector<8x512xf32>
    %c0_46 = arith.constant 0 : index
    %c0_47 = arith.constant 0 : index
    %89 = vector.load %arg5[%c0_46, %c0_47] : memref<128x512xf32, #tpu.memory_space<vmem>>, vector<128x512xf32>
    %cst_48 = arith.constant dense<0.000000e+00> : vector<8x512xf32>
    %90 = tpu.matmul %86, %89, %cst_48 {dimension_numbers = #tpu.dot_dimension_numbers<[1], [0], [0], [1], [0, 0, 1, 1], [], []>} : vector<8x128xf32>, vector<128x512xf32>, vector<8x512xf32> -> vector<8x512xf32>
    %91 = arith.addf %88, %90 : vector<8x512xf32>
    %92 = vector.extract_strided_slice %91 {offsets = [0, 0], sizes = [8, 128], strides = [1, 1]} : vector<8x512xf32> to vector<8x128xf32>
    %cst_49 = arith.constant 5.000000e-01 : f32
    %93 = vector.broadcast %cst_49 : f32 to vector<8x128xf32>
    %94 = arith.mulf %93, %92 : vector<8x128xf32>
    %95 = math.tanh %94 : vector<8x128xf32>
    %cst_50 = arith.constant 5.000000e-01 : f32
    %96 = vector.broadcast %cst_50 : f32 to vector<8x128xf32>
    %97 = arith.mulf %96, %95 : vector<8x128xf32>
    %cst_51 = arith.constant 5.000000e-01 : f32
    %98 = vector.broadcast %cst_51 : f32 to vector<8x128xf32>
    %99 = arith.addf %97, %98 : vector<8x128xf32>
    %100 = vector.extract_strided_slice %91 {offsets = [0, 128], sizes = [8, 128], strides = [1, 1]} : vector<8x512xf32> to vector<8x128xf32>
    %cst_52 = arith.constant 5.000000e-01 : f32
    %101 = vector.broadcast %cst_52 : f32 to vector<8x128xf32>
    %102 = arith.mulf %101, %100 : vector<8x128xf32>
    %103 = math.tanh %102 : vector<8x128xf32>
    %cst_53 = arith.constant 5.000000e-01 : f32
    %104 = vector.broadcast %cst_53 : f32 to vector<8x128xf32>
    %105 = arith.mulf %104, %103 : vector<8x128xf32>
    %cst_54 = arith.constant 5.000000e-01 : f32
    %106 = vector.broadcast %cst_54 : f32 to vector<8x128xf32>
    %107 = arith.addf %105, %106 : vector<8x128xf32>
    %108 = vector.extract_strided_slice %91 {offsets = [0, 256], sizes = [8, 128], strides = [1, 1]} : vector<8x512xf32> to vector<8x128xf32>
    %109 = math.tanh %108 : vector<8x128xf32>
    %110 = vector.extract_strided_slice %91 {offsets = [0, 384], sizes = [8, 128], strides = [1, 1]} : vector<8x512xf32> to vector<8x128xf32>
    %cst_55 = arith.constant 5.000000e-01 : f32
    %111 = vector.broadcast %cst_55 : f32 to vector<8x128xf32>
    %112 = arith.mulf %111, %110 : vector<8x128xf32>
    %113 = math.tanh %112 : vector<8x128xf32>
    %cst_56 = arith.constant 5.000000e-01 : f32
    %114 = vector.broadcast %cst_56 : f32 to vector<8x128xf32>
    %115 = arith.mulf %114, %113 : vector<8x128xf32>
    %cst_57 = arith.constant 5.000000e-01 : f32
    %116 = vector.broadcast %cst_57 : f32 to vector<8x128xf32>
    %117 = arith.addf %115, %116 : vector<8x128xf32>
    %118 = arith.mulf %107, %84 : vector<8x128xf32>
    %119 = arith.mulf %99, %109 : vector<8x128xf32>
    %120 = arith.addf %118, %119 : vector<8x128xf32>
    %121 = math.tanh %120 : vector<8x128xf32>
    %122 = arith.mulf %117, %121 : vector<8x128xf32>
    %c16_58 = arith.constant 16 : index
    %c0_59 = arith.constant 0 : index
    %123 = vector.load %arg13[%c16_58, %c0_59] : memref<64x128xf32, #tpu.memory_space<vmem>>, vector<8x128xf32>
    tpu.vector_store %arg13[%c16_58, %c0_59], %122 {strides = array<i32>} : memref<64x128xf32, #tpu.memory_space<vmem>>, vector<8x128xf32>,
    %c24 = arith.constant 24 : index
    %c0_60 = arith.constant 0 : index
    %124 = vector.load %arg12[%c24, %c0_60] : memref<64x512xf32, #tpu.memory_space<vmem>>, vector<8x512xf32>
    %c0_61 = arith.constant 0 : index
    %c0_62 = arith.constant 0 : index
    %125 = vector.load %arg5[%c0_61, %c0_62] : memref<128x512xf32, #tpu.memory_space<vmem>>, vector<128x512xf32>
    %cst_63 = arith.constant dense<0.000000e+00> : vector<8x512xf32>
    %126 = tpu.matmul %122, %125, %cst_63 {dimension_numbers = #tpu.dot_dimension_numbers<[1], [0], [0], [1], [0, 0, 1, 1], [], []>} : vector<8x128xf32>, vector<128x512xf32>, vector<8x512xf32> -> vector<8x512xf32>
    %127 = arith.addf %124, %126 : vector<8x512xf32>
    %128 = vector.extract_strided_slice %127 {offsets = [0, 0], sizes = [8, 128], strides = [1, 1]} : vector<8x512xf32> to vector<8x128xf32>
    %cst_64 = arith.constant 5.000000e-01 : f32
    %129 = vector.broadcast %cst_64 : f32 to vector<8x128xf32>
    %130 = arith.mulf %129, %128 : vector<8x128xf32>
    %131 = math.tanh %130 : vector<8x128xf32>
    %cst_65 = arith.constant 5.000000e-01 : f32
    %132 = vector.broadcast %cst_65 : f32 to vector<8x128xf32>
    %133 = arith.mulf %132, %131 : vector<8x128xf32>
    %cst_66 = arith.constant 5.000000e-01 : f32
    %134 = vector.broadcast %cst_66 : f32 to vector<8x128xf32>
    %135 = arith.addf %133, %134 : vector<8x128xf32>
    %136 = vector.extract_strided_slice %127 {offsets = [0, 128], sizes = [8, 128], strides = [1, 1]} : vector<8x512xf32> to vector<8x128xf32>
    %cst_67 = arith.constant 5.000000e-01 : f32
    %137 = vector.broadcast %cst_67 : f32 to vector<8x128xf32>
    %138 = arith.mulf %137, %136 : vector<8x128xf32>
    %139 = math.tanh %138 : vector<8x128xf32>
    %cst_68 = arith.constant 5.000000e-01 : f32
    %140 = vector.broadcast %cst_68 : f32 to vector<8x128xf32>
    %141 = arith.mulf %140, %139 : vector<8x128xf32>
    %cst_69 = arith.constant 5.000000e-01 : f32
    %142 = vector.broadcast %cst_69 : f32 to vector<8x128xf32>
    %143 = arith.addf %141, %142 : vector<8x128xf32>
    %144 = vector.extract_strided_slice %127 {offsets = [0, 256], sizes = [8, 128], strides = [1, 1]} : vector<8x512xf32> to vector<8x128xf32>
    %145 = math.tanh %144 : vector<8x128xf32>
    %146 = vector.extract_strided_slice %127 {offsets = [0, 384], sizes = [8, 128], strides = [1, 1]} : vector<8x512xf32> to vector<8x128xf32>
    %cst_70 = arith.constant 5.000000e-01 : f32
    %147 = vector.broadcast %cst_70 : f32 to vector<8x128xf32>
    %148 = arith.mulf %147, %146 : vector<8x128xf32>
    %149 = math.tanh %148 : vector<8x128xf32>
    %cst_71 = arith.constant 5.000000e-01 : f32
    %150 = vector.broadcast %cst_71 : f32 to vector<8x128xf32>
    %151 = arith.mulf %150, %149 : vector<8x128xf32>
    %cst_72 = arith.constant 5.000000e-01 : f32
    %152 = vector.broadcast %cst_72 : f32 to vector<8x128xf32>
    %153 = arith.addf %151, %152 : vector<8x128xf32>
    %154 = arith.mulf %143, %120 : vector<8x128xf32>
    %155 = arith.mulf %135, %145 : vector<8x128xf32>
    %156 = arith.addf %154, %155 : vector<8x128xf32>
    %157 = math.tanh %156 : vector<8x128xf32>
    %158 = arith.mulf %153, %157 : vector<8x128xf32>
    %c24_73 = arith.constant 24 : index
    %c0_74 = arith.constant 0 : index
    %159 = vector.load %arg13[%c24_73, %c0_74] : memref<64x128xf32, #tpu.memory_space<vmem>>, vector<8x128xf32>
    tpu.vector_store %arg13[%c24_73, %c0_74], %158 {strides = array<i32>} : memref<64x128xf32, #tpu.memory_space<vmem>>, vector<8x128xf32>,
    %c32 = arith.constant 32 : index
    %c0_75 = arith.constant 0 : index
    %160 = vector.load %arg12[%c32, %c0_75] : memref<64x512xf32, #tpu.memory_space<vmem>>, vector<8x512xf32>
    %c0_76 = arith.constant 0 : index
    %c0_77 = arith.constant 0 : index
    %161 = vector.load %arg5[%c0_76, %c0_77] : memref<128x512xf32, #tpu.memory_space<vmem>>, vector<128x512xf32>
    %cst_78 = arith.constant dense<0.000000e+00> : vector<8x512xf32>
    %162 = tpu.matmul %158, %161, %cst_78 {dimension_numbers = #tpu.dot_dimension_numbers<[1], [0], [0], [1], [0, 0, 1, 1], [], []>} : vector<8x128xf32>, vector<128x512xf32>, vector<8x512xf32> -> vector<8x512xf32>
    %163 = arith.addf %160, %162 : vector<8x512xf32>
    %164 = vector.extract_strided_slice %163 {offsets = [0, 0], sizes = [8, 128], strides = [1, 1]} : vector<8x512xf32> to vector<8x128xf32>
    %cst_79 = arith.constant 5.000000e-01 : f32
    %165 = vector.broadcast %cst_79 : f32 to vector<8x128xf32>
    %166 = arith.mulf %165, %164 : vector<8x128xf32>
    %167 = math.tanh %166 : vector<8x128xf32>
    %cst_80 = arith.constant 5.000000e-01 : f32
    %168 = vector.broadcast %cst_80 : f32 to vector<8x128xf32>
    %169 = arith.mulf %168, %167 : vector<8x128xf32>
    %cst_81 = arith.constant 5.000000e-01 : f32
    %170 = vector.broadcast %cst_81 : f32 to vector<8x128xf32>
    %171 = arith.addf %169, %170 : vector<8x128xf32>
    %172 = vector.extract_strided_slice %163 {offsets = [0, 128], sizes = [8, 128], strides = [1, 1]} : vector<8x512xf32> to vector<8x128xf32>
    %cst_82 = arith.constant 5.000000e-01 : f32
    %173 = vector.broadcast %cst_82 : f32 to vector<8x128xf32>
    %174 = arith.mulf %173, %172 : vector<8x128xf32>
    %175 = math.tanh %174 : vector<8x128xf32>
    %cst_83 = arith.constant 5.000000e-01 : f32
    %176 = vector.broadcast %cst_83 : f32 to vector<8x128xf32>
    %177 = arith.mulf %176, %175 : vector<8x128xf32>
    %cst_84 = arith.constant 5.000000e-01 : f32
    %178 = vector.broadcast %cst_84 : f32 to vector<8x128xf32>
    %179 = arith.addf %177, %178 : vector<8x128xf32>
    %180 = vector.extract_strided_slice %163 {offsets = [0, 256], sizes = [8, 128], strides = [1, 1]} : vector<8x512xf32> to vector<8x128xf32>
    %181 = math.tanh %180 : vector<8x128xf32>
    %182 = vector.extract_strided_slice %163 {offsets = [0, 384], sizes = [8, 128], strides = [1, 1]} : vector<8x512xf32> to vector<8x128xf32>
    %cst_85 = arith.constant 5.000000e-01 : f32
    %183 = vector.broadcast %cst_85 : f32 to vector<8x128xf32>
    %184 = arith.mulf %183, %182 : vector<8x128xf32>
    %185 = math.tanh %184 : vector<8x128xf32>
    %cst_86 = arith.constant 5.000000e-01 : f32
    %186 = vector.broadcast %cst_86 : f32 to vector<8x128xf32>
    %187 = arith.mulf %186, %185 : vector<8x128xf32>
    %cst_87 = arith.constant 5.000000e-01 : f32
    %188 = vector.broadcast %cst_87 : f32 to vector<8x128xf32>
    %189 = arith.addf %187, %188 : vector<8x128xf32>
    %190 = arith.mulf %179, %156 : vector<8x128xf32>
    %191 = arith.mulf %171, %181 : vector<8x128xf32>
    %192 = arith.addf %190, %191 : vector<8x128xf32>
    %193 = math.tanh %192 : vector<8x128xf32>
    %194 = arith.mulf %189, %193 : vector<8x128xf32>
    %c32_88 = arith.constant 32 : index
    %c0_89 = arith.constant 0 : index
    %195 = vector.load %arg13[%c32_88, %c0_89] : memref<64x128xf32, #tpu.memory_space<vmem>>, vector<8x128xf32>
    tpu.vector_store %arg13[%c32_88, %c0_89], %194 {strides = array<i32>} : memref<64x128xf32, #tpu.memory_space<vmem>>, vector<8x128xf32>,
    %c40 = arith.constant 40 : index
    %c0_90 = arith.constant 0 : index
    %196 = vector.load %arg12[%c40, %c0_90] : memref<64x512xf32, #tpu.memory_space<vmem>>, vector<8x512xf32>
    %c0_91 = arith.constant 0 : index
    %c0_92 = arith.constant 0 : index
    %197 = vector.load %arg5[%c0_91, %c0_92] : memref<128x512xf32, #tpu.memory_space<vmem>>, vector<128x512xf32>
    %cst_93 = arith.constant dense<0.000000e+00> : vector<8x512xf32>
    %198 = tpu.matmul %194, %197, %cst_93 {dimension_numbers = #tpu.dot_dimension_numbers<[1], [0], [0], [1], [0, 0, 1, 1], [], []>} : vector<8x128xf32>, vector<128x512xf32>, vector<8x512xf32> -> vector<8x512xf32>
    %199 = arith.addf %196, %198 : vector<8x512xf32>
    %200 = vector.extract_strided_slice %199 {offsets = [0, 0], sizes = [8, 128], strides = [1, 1]} : vector<8x512xf32> to vector<8x128xf32>
    %cst_94 = arith.constant 5.000000e-01 : f32
    %201 = vector.broadcast %cst_94 : f32 to vector<8x128xf32>
    %202 = arith.mulf %201, %200 : vector<8x128xf32>
    %203 = math.tanh %202 : vector<8x128xf32>
    %cst_95 = arith.constant 5.000000e-01 : f32
    %204 = vector.broadcast %cst_95 : f32 to vector<8x128xf32>
    %205 = arith.mulf %204, %203 : vector<8x128xf32>
    %cst_96 = arith.constant 5.000000e-01 : f32
    %206 = vector.broadcast %cst_96 : f32 to vector<8x128xf32>
    %207 = arith.addf %205, %206 : vector<8x128xf32>
    %208 = vector.extract_strided_slice %199 {offsets = [0, 128], sizes = [8, 128], strides = [1, 1]} : vector<8x512xf32> to vector<8x128xf32>
    %cst_97 = arith.constant 5.000000e-01 : f32
    %209 = vector.broadcast %cst_97 : f32 to vector<8x128xf32>
    %210 = arith.mulf %209, %208 : vector<8x128xf32>
    %211 = math.tanh %210 : vector<8x128xf32>
    %cst_98 = arith.constant 5.000000e-01 : f32
    %212 = vector.broadcast %cst_98 : f32 to vector<8x128xf32>
    %213 = arith.mulf %212, %211 : vector<8x128xf32>
    %cst_99 = arith.constant 5.000000e-01 : f32
    %214 = vector.broadcast %cst_99 : f32 to vector<8x128xf32>
    %215 = arith.addf %213, %214 : vector<8x128xf32>
    %216 = vector.extract_strided_slice %199 {offsets = [0, 256], sizes = [8, 128], strides = [1, 1]} : vector<8x512xf32> to vector<8x128xf32>
    %217 = math.tanh %216 : vector<8x128xf32>
    %218 = vector.extract_strided_slice %199 {offsets = [0, 384], sizes = [8, 128], strides = [1, 1]} : vector<8x512xf32> to vector<8x128xf32>
    %cst_100 = arith.constant 5.000000e-01 : f32
    %219 = vector.broadcast %cst_100 : f32 to vector<8x128xf32>
    %220 = arith.mulf %219, %218 : vector<8x128xf32>
    %221 = math.tanh %220 : vector<8x128xf32>
    %cst_101 = arith.constant 5.000000e-01 : f32
    %222 = vector.broadcast %cst_101 : f32 to vector<8x128xf32>
    %223 = arith.mulf %222, %221 : vector<8x128xf32>
    %cst_102 = arith.constant 5.000000e-01 : f32
    %224 = vector.broadcast %cst_102 : f32 to vector<8x128xf32>
    %225 = arith.addf %223, %224 : vector<8x128xf32>
    %226 = arith.mulf %215, %192 : vector<8x128xf32>
    %227 = arith.mulf %207, %217 : vector<8x128xf32>
    %228 = arith.addf %226, %227 : vector<8x128xf32>
    %229 = math.tanh %228 : vector<8x128xf32>
    %230 = arith.mulf %225, %229 : vector<8x128xf32>
    %c40_103 = arith.constant 40 : index
    %c0_104 = arith.constant 0 : index
    %231 = vector.load %arg13[%c40_103, %c0_104] : memref<64x128xf32, #tpu.memory_space<vmem>>, vector<8x128xf32>
    tpu.vector_store %arg13[%c40_103, %c0_104], %230 {strides = array<i32>} : memref<64x128xf32, #tpu.memory_space<vmem>>, vector<8x128xf32>,
    %c48 = arith.constant 48 : index
    %c0_105 = arith.constant 0 : index
    %232 = vector.load %arg12[%c48, %c0_105] : memref<64x512xf32, #tpu.memory_space<vmem>>, vector<8x512xf32>
    %c0_106 = arith.constant 0 : index
    %c0_107 = arith.constant 0 : index
    %233 = vector.load %arg5[%c0_106, %c0_107] : memref<128x512xf32, #tpu.memory_space<vmem>>, vector<128x512xf32>
    %cst_108 = arith.constant dense<0.000000e+00> : vector<8x512xf32>
    %234 = tpu.matmul %230, %233, %cst_108 {dimension_numbers = #tpu.dot_dimension_numbers<[1], [0], [0], [1], [0, 0, 1, 1], [], []>} : vector<8x128xf32>, vector<128x512xf32>, vector<8x512xf32> -> vector<8x512xf32>
    %235 = arith.addf %232, %234 : vector<8x512xf32>
    %236 = vector.extract_strided_slice %235 {offsets = [0, 0], sizes = [8, 128], strides = [1, 1]} : vector<8x512xf32> to vector<8x128xf32>
    %cst_109 = arith.constant 5.000000e-01 : f32
    %237 = vector.broadcast %cst_109 : f32 to vector<8x128xf32>
    %238 = arith.mulf %237, %236 : vector<8x128xf32>
    %239 = math.tanh %238 : vector<8x128xf32>
    %cst_110 = arith.constant 5.000000e-01 : f32
    %240 = vector.broadcast %cst_110 : f32 to vector<8x128xf32>
    %241 = arith.mulf %240, %239 : vector<8x128xf32>
    %cst_111 = arith.constant 5.000000e-01 : f32
    %242 = vector.broadcast %cst_111 : f32 to vector<8x128xf32>
    %243 = arith.addf %241, %242 : vector<8x128xf32>
    %244 = vector.extract_strided_slice %235 {offsets = [0, 128], sizes = [8, 128], strides = [1, 1]} : vector<8x512xf32> to vector<8x128xf32>
    %cst_112 = arith.constant 5.000000e-01 : f32
    %245 = vector.broadcast %cst_112 : f32 to vector<8x128xf32>
    %246 = arith.mulf %245, %244 : vector<8x128xf32>
    %247 = math.tanh %246 : vector<8x128xf32>
    %cst_113 = arith.constant 5.000000e-01 : f32
    %248 = vector.broadcast %cst_113 : f32 to vector<8x128xf32>
    %249 = arith.mulf %248, %247 : vector<8x128xf32>
    %cst_114 = arith.constant 5.000000e-01 : f32
    %250 = vector.broadcast %cst_114 : f32 to vector<8x128xf32>
    %251 = arith.addf %249, %250 : vector<8x128xf32>
    %252 = vector.extract_strided_slice %235 {offsets = [0, 256], sizes = [8, 128], strides = [1, 1]} : vector<8x512xf32> to vector<8x128xf32>
    %253 = math.tanh %252 : vector<8x128xf32>
    %254 = vector.extract_strided_slice %235 {offsets = [0, 384], sizes = [8, 128], strides = [1, 1]} : vector<8x512xf32> to vector<8x128xf32>
    %cst_115 = arith.constant 5.000000e-01 : f32
    %255 = vector.broadcast %cst_115 : f32 to vector<8x128xf32>
    %256 = arith.mulf %255, %254 : vector<8x128xf32>
    %257 = math.tanh %256 : vector<8x128xf32>
    %cst_116 = arith.constant 5.000000e-01 : f32
    %258 = vector.broadcast %cst_116 : f32 to vector<8x128xf32>
    %259 = arith.mulf %258, %257 : vector<8x128xf32>
    %cst_117 = arith.constant 5.000000e-01 : f32
    %260 = vector.broadcast %cst_117 : f32 to vector<8x128xf32>
    %261 = arith.addf %259, %260 : vector<8x128xf32>
    %262 = arith.mulf %251, %228 : vector<8x128xf32>
    %263 = arith.mulf %243, %253 : vector<8x128xf32>
    %264 = arith.addf %262, %263 : vector<8x128xf32>
    %265 = math.tanh %264 : vector<8x128xf32>
    %266 = arith.mulf %261, %265 : vector<8x128xf32>
    %c48_118 = arith.constant 48 : index
    %c0_119 = arith.constant 0 : index
    %267 = vector.load %arg13[%c48_118, %c0_119] : memref<64x128xf32, #tpu.memory_space<vmem>>, vector<8x128xf32>
    tpu.vector_store %arg13[%c48_118, %c0_119], %266 {strides = array<i32>} : memref<64x128xf32, #tpu.memory_space<vmem>>, vector<8x128xf32>,
    %c56 = arith.constant 56 : index
    %c0_120 = arith.constant 0 : index
    %268 = vector.load %arg12[%c56, %c0_120] : memref<64x512xf32, #tpu.memory_space<vmem>>, vector<8x512xf32>
    %c0_121 = arith.constant 0 : index
    %c0_122 = arith.constant 0 : index
    %269 = vector.load %arg5[%c0_121, %c0_122] : memref<128x512xf32, #tpu.memory_space<vmem>>, vector<128x512xf32>
    %cst_123 = arith.constant dense<0.000000e+00> : vector<8x512xf32>
    %270 = tpu.matmul %266, %269, %cst_123 {dimension_numbers = #tpu.dot_dimension_numbers<[1], [0], [0], [1], [0, 0, 1, 1], [], []>} : vector<8x128xf32>, vector<128x512xf32>, vector<8x512xf32> -> vector<8x512xf32>
    %271 = arith.addf %268, %270 : vector<8x512xf32>
    %272 = vector.extract_strided_slice %271 {offsets = [0, 0], sizes = [8, 128], strides = [1, 1]} : vector<8x512xf32> to vector<8x128xf32>
    %cst_124 = arith.constant 5.000000e-01 : f32
    %273 = vector.broadcast %cst_124 : f32 to vector<8x128xf32>
    %274 = arith.mulf %273, %272 : vector<8x128xf32>
    %275 = math.tanh %274 : vector<8x128xf32>
    %cst_125 = arith.constant 5.000000e-01 : f32
    %276 = vector.broadcast %cst_125 : f32 to vector<8x128xf32>
    %277 = arith.mulf %276, %275 : vector<8x128xf32>
    %cst_126 = arith.constant 5.000000e-01 : f32
    %278 = vector.broadcast %cst_126 : f32 to vector<8x128xf32>
    %279 = arith.addf %277, %278 : vector<8x128xf32>
    %280 = vector.extract_strided_slice %271 {offsets = [0, 128], sizes = [8, 128], strides = [1, 1]} : vector<8x512xf32> to vector<8x128xf32>
    %cst_127 = arith.constant 5.000000e-01 : f32
    %281 = vector.broadcast %cst_127 : f32 to vector<8x128xf32>
    %282 = arith.mulf %281, %280 : vector<8x128xf32>
    %283 = math.tanh %282 : vector<8x128xf32>
    %cst_128 = arith.constant 5.000000e-01 : f32
    %284 = vector.broadcast %cst_128 : f32 to vector<8x128xf32>
    %285 = arith.mulf %284, %283 : vector<8x128xf32>
    %cst_129 = arith.constant 5.000000e-01 : f32
    %286 = vector.broadcast %cst_129 : f32 to vector<8x128xf32>
    %287 = arith.addf %285, %286 : vector<8x128xf32>
    %288 = vector.extract_strided_slice %271 {offsets = [0, 256], sizes = [8, 128], strides = [1, 1]} : vector<8x512xf32> to vector<8x128xf32>
    %289 = math.tanh %288 : vector<8x128xf32>
    %290 = vector.extract_strided_slice %271 {offsets = [0, 384], sizes = [8, 128], strides = [1, 1]} : vector<8x512xf32> to vector<8x128xf32>
    %cst_130 = arith.constant 5.000000e-01 : f32
    %291 = vector.broadcast %cst_130 : f32 to vector<8x128xf32>
    %292 = arith.mulf %291, %290 : vector<8x128xf32>
    %293 = math.tanh %292 : vector<8x128xf32>
    %cst_131 = arith.constant 5.000000e-01 : f32
    %294 = vector.broadcast %cst_131 : f32 to vector<8x128xf32>
    %295 = arith.mulf %294, %293 : vector<8x128xf32>
    %cst_132 = arith.constant 5.000000e-01 : f32
    %296 = vector.broadcast %cst_132 : f32 to vector<8x128xf32>
    %297 = arith.addf %295, %296 : vector<8x128xf32>
    %298 = arith.mulf %287, %264 : vector<8x128xf32>
    %299 = arith.mulf %279, %289 : vector<8x128xf32>
    %300 = arith.addf %298, %299 : vector<8x128xf32>
    %301 = math.tanh %300 : vector<8x128xf32>
    %302 = arith.mulf %297, %301 : vector<8x128xf32>
    %c56_133 = arith.constant 56 : index
    %c0_134 = arith.constant 0 : index
    %303 = vector.load %arg13[%c56_133, %c0_134] : memref<64x128xf32, #tpu.memory_space<vmem>>, vector<8x128xf32>
    tpu.vector_store %arg13[%c56_133, %c0_134], %302 {strides = array<i32>} : memref<64x128xf32, #tpu.memory_space<vmem>>, vector<8x128xf32>,
    %c0_135 = arith.constant 0 : index
    %c0_136 = arith.constant 0 : index
    %304 = vector.load %arg10[%c0_135, %c0_136] : memref<8x128xf32, #tpu.memory_space<vmem>>, vector<8x128xf32>
    tpu.vector_store %arg10[%c0_135, %c0_136], %302 {strides = array<i32>} : memref<8x128xf32, #tpu.memory_space<vmem>>, vector<8x128xf32>,
    %c0_137 = arith.constant 0 : index
    %c0_138 = arith.constant 0 : index
    %305 = vector.load %arg11[%c0_137, %c0_138] : memref<8x128xf32, #tpu.memory_space<vmem>>, vector<8x128xf32>
    tpu.vector_store %arg11[%c0_137, %c0_138], %300 {strides = array<i32>} : memref<8x128xf32, #tpu.memory_space<vmem>>, vector<8x128xf32>,
    %c0_139 = arith.constant 0 : index
    %c0_140 = arith.constant 0 : index
    %306 = vector.load %arg13[%c0_139, %c0_140] : memref<64x128xf32, #tpu.memory_space<vmem>>, vector<64x128xf32>
    %c0_141 = arith.constant 0 : index
    %c0_142 = arith.constant 0 : index
    %307 = vector.load %arg7[%c0_141, %c0_142] : memref<128x128xf32, #tpu.memory_space<vmem>>, vector<128x128xf32>
    %cst_143 = arith.constant dense<0.000000e+00> : vector<64x128xf32>
    %308 = tpu.matmul %306, %307, %cst_143 {dimension_numbers = #tpu.dot_dimension_numbers<[1], [0], [0], [1], [0, 0, 1, 1], [], []>} : vector<64x128xf32>, vector<128x128xf32>, vector<64x128xf32> -> vector<64x128xf32>
    %c0_144 = arith.constant 0 : index
    %c0_145 = arith.constant 0 : index
    %309 = vector.load %arg8[%c0_144, %c0_145] : memref<1x128xf32, #tpu.memory_space<vmem>>, vector<1x128xf32>
    %310 = vector.broadcast %309 : vector<1x128xf32> to vector<64x128xf32>
    %311 = arith.addf %308, %310 : vector<64x128xf32>
    %312 = vector.shape_cast %311 : vector<64x128xf32> to vector<8x8x128xf32>
    %c0_146 = arith.constant 0 : index
    %c0_147 = arith.constant 0 : index
    %c0_148 = arith.constant 0 : index
    %313 = vector.load %arg9[%c0_146, %c0_147, %c0_148] : memref<8x8x128xf32, #tpu.memory_space<vmem>>, vector<8x8x128xf32>
    tpu.vector_store %arg9[%c0_146, %c0_147, %c0_148], %312 {strides = array<i32>} : memref<8x8x128xf32, #tpu.memory_space<vmem>>, vector<8x8x128xf32>,
    return
  }
  func.func @transform_0(%arg0: i32) -> (i32, i32, i32) {
    %c0_i32 = arith.constant 0 : i32
    %c0_i32_0 = arith.constant 0 : i32
    %c0_i32_1 = arith.constant 0 : i32
    return %c0_i32, %arg0, %c0_i32_0 : i32, i32, i32
  }
  func.func @transform_1(%arg0: i32) -> (i32, i32) {
    %c0_i32 = arith.constant 0 : i32
    %c0_i32_0 = arith.constant 0 : i32
    return %arg0, %c0_i32 : i32, i32
  }
  func.func @transform_2(%arg0: i32) -> (i32, i32) {
    %c0_i32 = arith.constant 0 : i32
    %c0_i32_0 = arith.constant 0 : i32
    return %arg0, %c0_i32 : i32, i32
  }
  func.func @transform_3(%arg0: i32) -> (i32, i32) {
    %c0_i32 = arith.constant 0 : i32
    %c0_i32_0 = arith.constant 0 : i32
    %c0_i32_1 = arith.constant 0 : i32
    return %c0_i32, %c0_i32_0 : i32, i32
  }
  func.func @transform_4(%arg0: i32) -> (i32, i32) {
    %c0_i32 = arith.constant 0 : i32
    %c0_i32_0 = arith.constant 0 : i32
    %c0_i32_1 = arith.constant 0 : i32
    return %c0_i32, %c0_i32_0 : i32, i32
  }
  func.func @transform_5(%arg0: i32) -> (i32, i32) {
    %c0_i32 = arith.constant 0 : i32
    %c0_i32_0 = arith.constant 0 : i32
    %c0_i32_1 = arith.constant 0 : i32
    return %c0_i32, %c0_i32_0 : i32, i32
  }
  func.func @transform_6(%arg0: i32) -> (i32, i32) {
    %c0_i32 = arith.constant 0 : i32
    %c0_i32_0 = arith.constant 0 : i32
    %c0_i32_1 = arith.constant 0 : i32
    return %c0_i32, %c0_i32_0 : i32, i32
  }
  func.func @transform_7(%arg0: i32) -> (i32, i32) {
    %c0_i32 = arith.constant 0 : i32
    %c0_i32_0 = arith.constant 0 : i32
    %c0_i32_1 = arith.constant 0 : i32
    return %c0_i32, %c0_i32_0 : i32, i32
  }
  func.func @transform_8(%arg0: i32) -> (i32, i32, i32) {
    %c0_i32 = arith.constant 0 : i32
    %c0_i32_0 = arith.constant 0 : i32
    %c0_i32_1 = arith.constant 0 : i32
    return %c0_i32, %arg0, %c0_i32_0 : i32, i32, i32
  }
  func.func @transform_9(%arg0: i32) -> (i32, i32) {
    %c0_i32 = arith.constant 0 : i32
    %c0_i32_0 = arith.constant 0 : i32
    return %arg0, %c0_i32 : i32, i32
  }
  func.func @transform_10(%arg0: i32) -> (i32, i32) {
    %c0_i32 = arith.constant 0 : i32
    %c0_i32_0 = arith.constant 0 : i32
    return %arg0, %c0_i32 : i32, i32
  }
}

</mosaic_0001>

<bundles_post_ra>
// kernel: char_decoder_forward.1
= control target key start
LH: loop header
LB: loop body
LE: loop exit
PB: predicated region body
PF: predicated region fallthrough
CT: control target
= control target key end

     0   :  { %16 = vsyncpa [#allocation5], 0  ;;  %s4213_s0 = inlined_call_operand.vmem [shape: s32[8,8,1], index: 0, kind: input, shape index: {}]   ;;  %s4214_s1 = inlined_call_operand.vmem [shape: f32[8,128], index: 1, kind: input, shape index: {}]   ;;  %s4215_s2 = inlined_call_operand.vmem [shape: f32[8,128], index: 2, kind: input, shape index: {}]   ;;  %s4216_s3 = inlined_call_operand.hbm [shape: f32[128,512], index: 3, kind: input, shape index: {}]   ;;  %s4217_s4 = inlined_call_operand.hbm [shape: f32[128,512], index: 4, kind: input, shape index: {}]   ;;  %s4218_s5 = inlined_call_operand.vmem [shape: f32[1,512], index: 5, kind: input, shape index: {}]   ;;  %s4219_s6 = inlined_call_operand.vmem [shape: f32[128,128], index: 6, kind: input, shape index: {}]   ;;  %s4220_s7 = inlined_call_operand.vmem [shape: f32[1,128], index: 7, kind: input, shape index: {}]   ;;  %s4221_s8 = inlined_call_operand.vmem [shape: f32[8,8,128], index: 8, kind: output, shape index: {0}]   ;;  %s4222_s9 = inlined_call_operand.vmem [shape: f32[8,128], index: 9, kind: output, shape index: {1}]   ;;  %s4223_s10 = inlined_call_operand.vmem [shape: f32[8,128], index: 10, kind: output, shape index: {2}]  }
   0x1   :  { %17 = vsyncpa [#allocation7], 0  ;;  %s3374_s13 = smov [#allocation4]   ;;  %s3326_s17 = scalar_lea.hbm %s4216_s3, 8192 }
   0x2   :  { %s29_s14 = sshll.u32 %s3374_s13, 4  ;;  %p3327_p0 = scmp.ne.s32.totalorder %s4216_s3, %s3326_s17  ;;  %s30_s14 = int_to_ptr.vmem [resolvable:$true] %s29_s14 }
   0x3   :  { %p3330_p1 = scmp.lt.u32.totalorder %s3326_s17, %s4216_s3 }
   0x5   :  { %p3332_p2 = pnand %p3330_p1, %p3327_p0 }
   0x7   :  { %3335 = shalt.err (!%p3332_p2)
}
   0x8   :  { %s3336_s22 = scalar_lea.vmem %s30_s14, 8192  ;;  %p3341_p4 = scmp.lt.s32.totalorder %s30_s14, %s30_s14 }
   0x9   :  { %p3337_p3 = scmp.ne.s32.totalorder %s30_s14, %s3336_s22  ;;  %p3342_p5 = scmp.lt.s32.totalorder %s3336_s22, %s3336_s22 }
   0xb   :  { %p3343_p6 = por %p3342_p5, %p3341_p4 }
   0xd   :  { %p3344_p7 = pnand %p3343_p6, %p3337_p3 }
   0xf   :  { %3347 = shalt.err (!%p3344_p7)
}
  0x10   :  { %s3375_s23 = smov 512   ;;  %s3376_s24 = smov 32  }
  0x11   :  { %35 = dma.hbm_to_vmem [thread:$0]  %s4216_s3, 8192, %s30_s14, [#allocation5], %s3375_s23, %s3375_s23, %s3376_s24  }
  0x12   :  { %s3377_s27 = smov [#allocation6]   ;;  %s3348_s11 = scalar_lea.hbm %s4217_s4, 8192 }
  0x13   :  { %s41_s28 = sshll.u32 %s3377_s27, 4  ;;  %p3349_p8 = scmp.ne.s32.totalorder %s4217_s4, %s3348_s11  ;;  %s42_s28 = int_to_ptr.vmem [resolvable:$true] %s41_s28 }
  0x14   :  { %p3352_p9 = scmp.lt.u32.totalorder %s3348_s11, %s4217_s4 }
  0x16   :  { %p3354_p10 = pnand %p3352_p9, %p3349_p8 }
  0x18   :  { %3357 = shalt.err (!%p3354_p10)
}
  0x19   :  { %s3358_s17 = scalar_lea.vmem %s42_s28, 8192  ;;  %p3363_p12 = scmp.lt.s32.totalorder %s42_s28, %s42_s28 }
  0x1a   :  { %p3359_p11 = scmp.ne.s32.totalorder %s42_s28, %s3358_s17  ;;  %p3364_p13 = scmp.lt.s32.totalorder %s3358_s17, %s3358_s17 }
  0x1c   :  { %p3365_p0 = por %p3364_p13, %p3363_p12 }
  0x1e   :  { %p3366_p1 = pnand %p3365_p0, %p3359_p11 }
  0x20   :  { %3369 = shalt.err (!%p3366_p1)
}
  0x21   :  { %47 = dma.hbm_to_vmem [thread:$0]  %s4217_s4, 8192, %s42_s28, [#allocation7], %s3375_s23, %s3375_s23, %s3376_s24  }
  0x22   :  { %3370 = dma.done.wait [#allocation5], 8192  }
  0x23   :  { %3371 = vsyncadd [#allocation5], 4294959104 }
  0x24   :  { %3372 = dma.done.wait [#allocation7], 8192  }
  0x25   :  { %3373 = vsyncadd [#allocation7], 4294959104  ;;  %v3378_v0 = vmov 0   ;;  %v62_v1 = vld [vmem:[%s4213_s0 + $0x10] sm:$0xff]  ;;  %v60_v2 = vld [vmem:[%s4213_s0] sm:$0xff]  ;;  %v4224_v6 = vmov 0.0  }
  0x26   :  { %3245 = vset.pattern.permute.xlu1 %v3378_v0  ;;  %3244 = vset.pattern.permute.xlu0 %v3378_v0  ;;  %v63_v3 = vld [vmem:[%s4213_s0 + $0x18] sm:$0xff]  ;;  %v61_v4 = vld [vmem:[%s4213_s0 + $0x8] sm:$0xff]  ;;  %v110_v8 = vld [vmem:[#allocation4] sm:$0xff] }
  0x27   :  { %77 = vperm.xlu1 %3245, %v62_v1   ;;  %71 = vperm.xlu0 %3244, %v60_v2   ;;  %v111_v5 = vld [vmem:[#allocation4 + $0x8] sm:$0xff]  ;;  %v114_v9 = vld [vmem:[#allocation4 + $0x20] sm:$0xff]  ;;  %v67_v30 = vld [vmem:[%s4213_s0 + $0x38] sm:$0xff] }
  0x28   :  { %260 = vmatprep.mubr.f32.mxu1 %v4224_v6  ;;  %588 = vmatprep.mubr.f32.mxu0 %v4224_v6  ;;  %v115_v7 = vld [vmem:[#allocation4 + $0x28] sm:$0xff]  ;;  %v64_v11 = vld [vmem:[%s4213_s0 + $0x20] sm:$0xff]  ;;  %v2567_v13 = vpack.c.bf16 %v114_v9, %v110_v8  ;;  %v66_v31 = vld [vmem:[%s4213_s0 + $0x30] sm:$0xff] }
  0x29   :  { %v65_v10 = vld [vmem:[%s4213_s0 + $0x28] sm:$0xff]  ;;  %v2565_v12 = vpack.c.bf16 %v115_v7, %v111_v5  ;;  %v460_v19 = vld [vmem:[#allocation6] sm:$0xff] }
  0x2a   :  { %v461_v14 = vld [vmem:[#allocation6 + $0x8] sm:$0xff]  ;;  %v464_v20 = vld [vmem:[#allocation6 + $0x20] sm:$0xff] }
  0x2b   :  { %v465_v15 = vld [vmem:[#allocation6 + $0x28] sm:$0xff]  ;;  %80 = vperm.xlu1 %3245, %v63_v3   ;;  %74 = vperm.xlu0 %3244, %v61_v4   ;;  %v3482_v22 = vpack.c.bf16 %v464_v20, %v460_v19  ;;  %v118_v23 = vld [vmem:[#allocation4 + $0x40] sm:$0xff] }
  0x2c   :  { %v119_v16 = vld [vmem:[#allocation4 + $0x48] sm:$0xff]  ;;  %v3480_v17 = vpack.c.bf16 %v465_v15, %v461_v14  ;;  %2566 = vmatprep.subr.bf16.mxu1 %v2565_v12  ;;  %v122_v24 = vld [vmem:[#allocation4 + $0x60] sm:$0xff] }
  0x2d   :  { %v123_v18 = vld [vmem:[#allocation4 + $0x68] sm:$0xff]  ;;  %2568 = vmatpush1.bf16.msra.mxu1 %v2567_v13  ;;  %v2571_v26 = vpack.c.bf16 %v122_v24, %v118_v23  ;;  %v468_v34 = vld [vmem:[#allocation6 + $0x40] sm:$0xff] }
  0x2e   :  { %v2569_v21 = vpack.c.bf16 %v123_v18, %v119_v16  ;;  %v469_v25 = vld [vmem:[#allocation6 + $0x48] sm:$0xff]  ;;  %2630 = vmatprep.subr.bf16.mxu0 %v3480_v17  ;;  %v472_v35 = vld [vmem:[#allocation6 + $0x60] sm:$0xff] }
  0x2f   :  { %v473_v27 = vld [vmem:[#allocation6 + $0x68] sm:$0xff]  ;;  %2632 = vmatpush1.bf16.msra.mxu0 %v3482_v22  ;;  %v126_v36 = vld [vmem:[#allocation4 + $0x80] sm:$0xff]  ;;  %86 = vperm.xlu1 %3245, %v65_v10   ;;  %v3494_v37 = vpack.c.bf16 %v472_v35, %v468_v34 }
  0x30   :  { %v127_v28 = vld [vmem:[#allocation4 + $0x88] sm:$0xff]  ;;  %2570 = vmatprep.subr.bf16.mxu1 %v2569_v21  ;;  %v3492_v32 = vpack.c.bf16 %v473_v27, %v469_v25  ;;  %83 = vperm.xlu0 %3244, %v64_v11   ;;  %v130_v38 = vld [vmem:[#allocation4 + $0xa0] sm:$0xff] }
  0x31   :  { %v131_v29 = vld [vmem:[#allocation4 + $0xa8] sm:$0xff]  ;;  %v476_v44 = vld [vmem:[#allocation6 + $0x80] sm:$0xff]  ;;  %2572 = vmatpush1.bf16.msra.mxu1 %v2571_v26  ;;  %v2575_v45 = vpack.c.bf16 %v130_v38, %v126_v36 }
  0x32   :  { %v2573_v33 = vpack.c.bf16 %v131_v29, %v127_v28  ;;  %v477_v39 = vld [vmem:[#allocation6 + $0x88] sm:$0xff]  ;;  %2634 = vmatprep.subr.bf16.mxu0 %v3492_v32  ;;  %v480_v46 = vld [vmem:[#allocation6 + $0xa0] sm:$0xff] }
  0x33   :  { %v481_v40 = vld [vmem:[#allocation6 + $0xa8] sm:$0xff]  ;;  %v134_v47 = vld [vmem:[#allocation4 + $0xc0] sm:$0xff]  ;;  %2636 = vmatpush1.bf16.msra.mxu0 %v3494_v37  ;;  %v3500_v50 = vpack.c.bf16 %v480_v46, %v476_v44  ;;  %92 = vperm.xlu1 %3245, %v67_v30  }
  0x34   :  { %v3497_v41 = vpack.c.bf16 %v481_v40, %v477_v39  ;;  %v135_v42 = vld [vmem:[#allocation4 + $0xc8] sm:$0xff]  ;;  %v138_v48 = vld [vmem:[#allocation4 + $0xe0] sm:$0xff]  ;;  %2574 = vmatprep.subr.bf16.mxu1 %v2573_v33  ;;  %89 = vperm.xlu0 %3244, %v66_v31  }
  0x35   :  { %v139_v43 = vld [vmem:[#allocation4 + $0xe8] sm:$0xff]  ;;  %v484_v56 = vld [vmem:[#allocation6 + $0xc0] sm:$0xff]  ;;  %2576 = vmatpush1.bf16.msra.mxu1 %v2575_v45  ;;  %v2579_v59 = vpack.c.bf16 %v138_v48, %v134_v47  ;;  %v117_v45 = vld [vmem:[#allocation4 + $0x38] sm:$0xff] }
  0x36   :  { %v2577_v49 = vpack.c.bf16 %v139_v43, %v135_v42  ;;  %v485_v51 = vld [vmem:[#allocation6 + $0xc8] sm:$0xff]  ;;  %v488_v57 = vld [vmem:[#allocation6 + $0xe0] sm:$0xff]  ;;  %2638 = vmatprep.subr.bf16.mxu0 %v3497_v41  ;;  %v113_v43 = vld [vmem:[#allocation4 + $0x18] sm:$0xff] }
  0x37   :  { %v489_v52 = vld [vmem:[#allocation6 + $0xe8] sm:$0xff]  ;;  %2640 = vmatpush1.bf16.msra.mxu0 %v3500_v50  ;;  %v3506_v62 = vpack.c.bf16 %v488_v57, %v484_v56  ;;  %v142_v63 = vld [vmem:[#allocation4 + $0x100] sm:$0xff]  ;;  %v120_v56 = vld [vmem:[#allocation4 + $0x50] sm:$0xff] }
  0x38   :  { %v143_v53 = vld [vmem:[#allocation4 + $0x108] sm:$0xff]  ;;  %v3502_v54 = vpack.c.bf16 %v489_v52, %v485_v51  ;;  %2578 = vmatprep.subr.bf16.mxu1 %v2577_v49  ;;  %v146_v0 = vld [vmem:[#allocation4 + $0x120] sm:$0xff]  ;;  %v2597_v49 = vpack.c.bf16 %v117_v45, %v113_v43  ;;  %v124_v57 = vld [vmem:[#allocation4 + $0x70] sm:$0xff] }
  0x39   :  { %v147_v55 = vld [vmem:[#allocation4 + $0x128] sm:$0xff]  ;;  %v492_v4 = vld [vmem:[#allocation6 + $0x100] sm:$0xff]  ;;  %2580 = vmatpush1.bf16.msra.mxu1 %v2579_v59  ;;  %v2583_v9 = vpack.c.bf16 %v146_v0, %v142_v63  ;;  %v133_v59 = vld [vmem:[#allocation4 + $0xb8] sm:$0xff] }
  0x3a   :  { %v493_v58 = vld [vmem:[#allocation6 + $0x108] sm:$0xff]  ;;  %v2581_v61 = vpack.c.bf16 %v147_v55, %v143_v53  ;;  %2642 = vmatprep.subr.bf16.mxu0 %v3502_v54  ;;  %v496_v5 = vld [vmem:[#allocation6 + $0x120] sm:$0xff]  ;;  %v128_v0 = vld [vmem:[#allocation4 + $0x90] sm:$0xff] }
  0x3b   :  { %v497_v60 = vld [vmem:[#allocation6 + $0x128] sm:$0xff]  ;;  %2644 = vmatpush1.bf16.msra.mxu0 %v3506_v62  ;;  %v2647_v11 = vpack.c.bf16 %v496_v5, %v492_v4  ;;  %v150_v12 = vld [vmem:[#allocation4 + $0x140] sm:$0xff]  ;;  %v463_v43 = vld [vmem:[#allocation6 + $0x18] sm:$0xff] }
  0x3c   :  { %v151_v1 = vld [vmem:[#allocation4 + $0x148] sm:$0xff]  ;;  %v3509_v2 = vpack.c.bf16 %v497_v60, %v493_v58  ;;  %2582 = vmatprep.subr.bf16.mxu1 %v2581_v61  ;;  %v154_v13 = vld [vmem:[#allocation4 + $0x160] sm:$0xff]  ;;  %v129_v58 = vld [vmem:[#allocation4 + $0x98] sm:$0xff]  ;;  %v3380_v60 = vmov 1.0   ;;  %v2603_v61 = vpack.c.bf16 %v124_v57, %v120_v56 }
  0x3d   :  { %v155_v3 = vld [vmem:[#allocation4 + $0x168] sm:$0xff]  ;;  %v500_v18 = vld [vmem:[#allocation6 + $0x140] sm:$0xff]  ;;  %2584 = vmatpush1.bf16.msra.mxu1 %v2583_v9  ;;  %v2587_v23 = vpack.c.bf16 %v154_v13, %v150_v12  ;;  %v2605_v63 = vpack.c.bf16 %v133_v59, %v129_v58  ;;  %v140_v9 = vld [vmem:[#allocation4 + $0xf0] sm:$0xff] }
  0x3e   :  { %v501_v7 = vld [vmem:[#allocation6 + $0x148] sm:$0xff]  ;;  %v2585_v10 = vpack.c.bf16 %v155_v3, %v151_v1  ;;  %2646 = vmatprep.subr.bf16.mxu0 %v3509_v2  ;;  %v504_v19 = vld [vmem:[#allocation6 + $0x160] sm:$0xff]  ;;  %v132_v1 = vld [vmem:[#allocation4 + $0xb0] sm:$0xff] }
  0x3f   :  { %v505_v8 = vld [vmem:[#allocation6 + $0x168] sm:$0xff]  ;;  %2648 = vmatpush1.bf16.msra.mxu0 %v2647_v11  ;;  %v2651_v25 = vpack.c.bf16 %v504_v19, %v500_v18  ;;  %v158_v26 = vld [vmem:[#allocation4 + $0x180] sm:$0xff]  ;;  %v141_v3 = vld [vmem:[#allocation4 + $0xf8] sm:$0xff]  ;;  %v2607_v5 = vpack.c.bf16 %v132_v1, %v128_v0 }
  0x40   :  { %v159_v14 = vld [vmem:[#allocation4 + $0x188] sm:$0xff]  ;;  %v2649_v15 = vpack.c.bf16 %v505_v8, %v501_v7  ;;  %2586 = vmatprep.subr.bf16.mxu1 %v2585_v10  ;;  %v162_v27 = vld [vmem:[#allocation4 + $0x1a0] sm:$0xff]  ;;  %v136_v8 = vld [vmem:[#allocation4 + $0xd0] sm:$0xff] }
  0x41   :  { %v163_v16 = vld [vmem:[#allocation4 + $0x1a8] sm:$0xff]  ;;  %v508_v31 = vld [vmem:[#allocation6 + $0x180] sm:$0xff]  ;;  %2588 = vmatpush1.bf16.msra.mxu1 %v2587_v23  ;;  %v2591_v36 = vpack.c.bf16 %v162_v27, %v158_v26  ;;  %v145_v10 = vld [vmem:[#allocation4 + $0x118] sm:$0xff]  ;;  %v2611_v12 = vpack.c.bf16 %v140_v9, %v136_v8 }
  0x42   :  { %v509_v20 = vld [vmem:[#allocation6 + $0x188] sm:$0xff]  ;;  %v2589_v24 = vpack.c.bf16 %v163_v16, %v159_v14  ;;  %2650 = vmatprep.subr.bf16.mxu0 %v2649_v15  ;;  %v512_v33 = vld [vmem:[#allocation6 + $0x1a0] sm:$0xff]  ;;  %v148_v16 = vld [vmem:[#allocation4 + $0x130] sm:$0xff] }
  0x43   :  { %v513_v21 = vld [vmem:[#allocation6 + $0x1a8] sm:$0xff]  ;;  %2652 = vmatpush1.bf16.msra.mxu0 %v2651_v25  ;;  %v2655_v39 = vpack.c.bf16 %v512_v33, %v508_v31  ;;  %v166_v40 = vld [vmem:[#allocation4 + $0x1c0] sm:$0xff]  ;;  %v153_v18 = vld [vmem:[#allocation4 + $0x158] sm:$0xff] }
  0x44   :  { %v167_v28 = vld [vmem:[#allocation4 + $0x1c8] sm:$0xff]  ;;  %v2653_v29 = vpack.c.bf16 %v513_v21, %v509_v20  ;;  %2590 = vmatprep.subr.bf16.mxu1 %v2589_v24  ;;  %v170_v42 = vld [vmem:[#allocation4 + $0x1e0] sm:$0xff]  ;;  %v157_v19 = vld [vmem:[#allocation4 + $0x178] sm:$0xff] }
  0x45   :  { %v171_v30 = vld [vmem:[#allocation4 + $0x1e8] sm:$0xff]  ;;  %v516_v46 = vld [vmem:[#allocation6 + $0x1c0] sm:$0xff]  ;;  %2592 = vmatpush1.bf16.msra.mxu1 %v2591_v36  ;;  %v2595_v48 = vpack.c.bf16 %v170_v42, %v166_v40  ;;  %v2617_v23 = vpack.c.bf16 %v157_v19, %v153_v18  ;;  %v152_v24 = vld [vmem:[#allocation4 + $0x150] sm:$0xff] }
  0x46   :  { %v517_v34 = vld [vmem:[#allocation6 + $0x1c8] sm:$0xff]  ;;  %v2593_v38 = vpack.c.bf16 %v171_v30, %v167_v28  ;;  %2654 = vmatprep.subr.bf16.mxu0 %v2653_v29  ;;  %v520_v47 = vld [vmem:[#allocation6 + $0x1e0] sm:$0xff]  ;;  %v161_v26 = vld [vmem:[#allocation4 + $0x198] sm:$0xff] }
  0x47   :  { %v521_v35 = vld [vmem:[#allocation6 + $0x1e8] sm:$0xff]  ;;  %2656 = vmatpush1.bf16.msra.mxu0 %v2655_v39  ;;  %v2659_v51 = vpack.c.bf16 %v520_v47, %v516_v46  ;;  %v3516_v52 = vld [vmem:[%s4214_s1] sm:$0xff]  ;;  %v165_v27 = vld [vmem:[#allocation4 + $0x1b8] sm:$0xff] }
  0x48   :  { %v2657_v44 = vpack.c.bf16 %v521_v35, %v517_v34  ;;  %2594 = vmatprep.subr.bf16.mxu1 %v2593_v38  ;;  %v2621_v30 = vpack.c.bf16 %v165_v27, %v161_v26  ;;  %v160_v31 = vld [vmem:[#allocation4 + $0x190] sm:$0xff]  ;;  %v169_v34 = vld [vmem:[#allocation4 + $0x1d8] sm:$0xff] }
  0x49   :  { %2596 = vmatpush1.bf16.msra.mxu1 %v2595_v48  ;;  %v164_v33 = vld [vmem:[#allocation4 + $0x1b0] sm:$0xff]  ;;  %v173_v35 = vld [vmem:[#allocation4 + $0x1f8] sm:$0xff] }
  0x4a   :  { %2658 = vmatprep.subr.bf16.mxu0 %v2657_v44  ;;  %2598 = vmatprep.subr.bf16.mxu1 %v2597_v49  ;;  %v2623_v38 = vpack.c.bf16 %v164_v33, %v160_v31  ;;  %v168_v40 = vld [vmem:[#allocation4 + $0x1d0] sm:$0xff]  ;;  %v483_v56 = vld [vmem:[#allocation6 + $0xb8] sm:$0xff]  ;;  %v174_v33 = vld [vmem:[%s4218_s5] sm:$0xf] }
  0x4b   :  { %2660 = vmatpush1.bf16.msra.mxu0 %v2659_v51  ;;  %v172_v42 = vld [vmem:[#allocation4 + $0x1f0] sm:$0xff]  ;;  %v491_v0 = vld [vmem:[#allocation6 + $0xf8] sm:$0xff] }
  0x4c   :  { %2694 = vmatprep.subr.bf16.mxu0 %v3480_v17  ;;  %v68_v17 = vlaneseq  ;;  %v2627_v46 = vpack.c.bf16 %v172_v42, %v168_v40  ;;  %v462_v48 = vld [vmem:[#allocation6 + $0x10] sm:$0xff]  ;;  %v511_v18 = vld [vmem:[#allocation6 + $0x198] sm:$0xff] }
  0x4d   :  { %v466_v49 = vld [vmem:[#allocation6 + $0x30] sm:$0xff]  ;;  %v515_v19 = vld [vmem:[#allocation6 + $0x1b8] sm:$0xff] }
  0x4e   :  { %589 = vmatmul.mubr.f32.vlgmr.msra.gmra.mrb[0].mxu0 %v3516_v52  ;;  %v478_v59 = vld [vmem:[#allocation6 + $0x90] sm:$0xff]  ;;  %v523_v26 = vld [vmem:[#allocation6 + $0x1f8] sm:$0xff] }
  0x4f   :  { %2696 = vmatpush1.bf16.msra.mxu0 %v3482_v22  ;;  %821 = vmatprep.mubr.f32.mxu0 %v4224_v6  ;;  %v112_v22 = vld [vmem:[#allocation4 + $0x10] sm:$0xff] }
  0x50   :  { %2698 = vmatprep.subr.bf16.mxu0 %v3492_v32  ;;  %v116_v32 = vld [vmem:[#allocation4 + $0x30] sm:$0xff] }
  0x51   :  { %v2599_v53 = vpack.c.bf16 %v116_v32, %v112_v22  ;;  %v475_v22 = vld [vmem:[#allocation6 + $0x78] sm:$0xff]  ;;  %v3606_v32 = vpack.c.bf16 %v466_v49, %v462_v48  ;;  %v494_v9 = vld [vmem:[#allocation6 + $0x110] sm:$0xff] }
  0x53   :  { %2700 = vmatpush1.bf16.msra.mxu0 %v3494_v37  ;;  %v3530_v37 = vand.u32 127, %v68_v17 }
  0x54   :  { %2702 = vmatprep.subr.bf16.mxu0 %v3497_v41  ;;  %v121_v41 = vld [vmem:[#allocation4 + $0x58] sm:$0xff] }
  0x57   :  { %2704 = vmatpush1.bf16.msra.mxu0 %v3500_v50  ;;  %v125_v50 = vld [vmem:[#allocation4 + $0x78] sm:$0xff] }
  0x58   :  { %2706 = vmatprep.subr.bf16.mxu0 %v3502_v54  ;;  %v2601_v55 = vpack.c.bf16 %v125_v50, %v121_v41  ;;  %v470_v50 = vld [vmem:[#allocation6 + $0x50] sm:$0xff] }
  0x5b   :  { %2708 = vmatpush1.bf16.msra.mxu0 %v3506_v62 }
  0x5c   :  { %2710 = vmatprep.subr.bf16.mxu0 %v3509_v2  ;;  %v137_v2 = vld [vmem:[#allocation4 + $0xd8] sm:$0xff] }
  0x5d   :  { %v2609_v7 = vpack.c.bf16 %v141_v3, %v137_v2  ;;  %v486_v2 = vld [vmem:[#allocation6 + $0xd0] sm:$0xff] }
  0x5e   :  { %v490_v3 = vld [vmem:[#allocation6 + $0xf0] sm:$0xff] }
  0x5f   :  { %2712 = vmatpush1.bf16.msra.mxu0 %v2647_v11  ;;  %v149_v11 = vld [vmem:[#allocation4 + $0x138] sm:$0xff] }
  0x60   :  { %2714 = vmatprep.subr.bf16.mxu0 %v2649_v15  ;;  %v2613_v14 = vpack.c.bf16 %v149_v11, %v145_v10  ;;  %v144_v15 = vld [vmem:[#allocation4 + $0x110] sm:$0xff]  ;;  %v503_v11 = vld [vmem:[#allocation6 + $0x158] sm:$0xff] }
  0x61   :  { %v2615_v21 = vpack.c.bf16 %v148_v16, %v144_v15  ;;  %v498_v10 = vld [vmem:[#allocation6 + $0x130] sm:$0xff] }
  0x62   :  { %v502_v15 = vld [vmem:[#allocation6 + $0x150] sm:$0xff] }
  0x63   :  { %2716 = vmatpush1.bf16.msra.mxu0 %v2651_v25  ;;  %v156_v25 = vld [vmem:[#allocation4 + $0x170] sm:$0xff] }
  0x64   :  { %2718 = vmatprep.subr.bf16.mxu0 %v2653_v29  ;;  %v2619_v29 = vpack.c.bf16 %v156_v25, %v152_v24  ;;  %v506_v16 = vld [vmem:[#allocation6 + $0x170] sm:$0xff]  ;;  %v519_v25 = vld [vmem:[#allocation6 + $0x1d8] sm:$0xff] }
  0x65   :  { %v514_v24 = vld [vmem:[#allocation6 + $0x1b0] sm:$0xff]  ;;  %v3675_v27 = vpack.c.bf16 %v523_v26, %v519_v25 }
  0x67   :  { %2720 = vmatpush1.bf16.msra.mxu0 %v2655_v39  ;;  %v2625_v39 = vpack.c.bf16 %v173_v35, %v169_v34 }
  0x68   :  { %2722 = vmatprep.subr.bf16.mxu0 %v2657_v44  ;;  %v467_v44 = vld [vmem:[#allocation6 + $0x38] sm:$0xff] }
  0x69   :  { %v3597_v47 = vpack.c.bf16 %v467_v44, %v463_v43 }
  0x6b   :  { %2724 = vmatpush1.bf16.msra.mxu0 %v2659_v51  ;;  %v471_v51 = vld [vmem:[#allocation6 + $0x58] sm:$0xff] }
  0x6c   :  { %v3609_v41 = vpack.c.bf16 %v475_v22, %v471_v51 }
  0xa6   :  { %v3532_v54 = vpop.permute.xlu0 %71  ;;  %v3545_v4 = vpop.permute.xlu1 %77 }
  0xa7   :  { %vm94_vm0 = vcmp.eq.s32.totalorder %v3532_v54, %v3530_v37  ;;  %vm96_vm2 = vcmp.eq.s32.totalorder %v3545_v4, %v3530_v37  ;;  %v3650_v4 = vpack.c.bf16 %v498_v10, %v494_v9 }
  0xa8   :  { %2480 = vmatmul.mubr.msk.f32.vlgmr.msra.gmra.mrb[0].mxu1 %vm94_vm0, %v3380_v60 }
  0xa9   :  { %2600 = vmatpush1.bf16.msra.mxu1 %v2599_v53  ;;  %266 = vmatprep.mubr.f32.mxu1 %v4224_v6  ;;  %v474_v53 = vld [vmem:[#allocation6 + $0x70] sm:$0xff] }
  0xaa   :  { %v3541_v62 = vpop.permute.xlu0 %74  ;;  %2602 = vmatprep.subr.bf16.mxu1 %v2601_v55  ;;  %v3559_v13 = vpop.permute.xlu1 %80  ;;  %v479_v55 = vld [vmem:[#allocation6 + $0x98] sm:$0xff]  ;;  %v3617_v57 = vpack.c.bf16 %v474_v53, %v470_v50 }
  0xab   :  { %vm95_vm1 = vcmp.eq.s32.totalorder %v3541_v62, %v3530_v37  ;;  %vm97_vm3 = vcmp.eq.s32.totalorder %v3559_v13, %v3530_v37  ;;  %v3620_v58 = vpack.c.bf16 %v483_v56, %v479_v55  ;;  %v3639_v62 = vpack.c.bf16 %v490_v3, %v486_v2 }
  0xac   :  { %2481 = vmatmul.mubr.msk.f32.gmra.mrb[2].mxu1 %vm95_vm1, %v3380_v60  ;;  %v3661_v13 = vpack.c.bf16 %v506_v16, %v502_v15 }
  0xad   :  { %2604 = vmatpush1.bf16.msra.mxu1 %v2603_v61  ;;  %272 = vmatprep.mubr.f32.mxu1 %v4224_v6  ;;  %v482_v61 = vld [vmem:[#allocation6 + $0xb0] sm:$0xff] }
  0xae   :  { %2606 = vmatprep.subr.bf16.mxu1 %v2605_v63  ;;  %v3572_v28 = vpop.permute.xlu1 %86  ;;  %v487_v63 = vld [vmem:[#allocation6 + $0xd8] sm:$0xff]  ;;  %v3628_v54 = vpack.c.bf16 %v482_v61, %v478_v59 }
  0xaf   :  { %v3563_v20 = vpop.permute.xlu0 %83  ;;  %vm99_vm5 = vcmp.eq.s32.totalorder %v3572_v28, %v3530_v37  ;;  %v3631_v1 = vpack.c.bf16 %v491_v0, %v487_v63 }
  0xb0   :  { %2482 = vmatmul.mubr.msk.f32.gmra.mrb[4].mxu1 %vm96_vm2, %v3380_v60  ;;  %vm98_vm4 = vcmp.eq.s32.totalorder %v3563_v20, %v3530_v37 }
  0xb1   :  { %2608 = vmatpush1.bf16.msra.mxu1 %v2607_v5  ;;  %278 = vmatprep.mubr.f32.mxu1 %v4224_v6  ;;  %v495_v5 = vld [vmem:[#allocation6 + $0x118] sm:$0xff] }
  0xb2   :  { %2610 = vmatprep.subr.bf16.mxu1 %v2609_v7  ;;  %v3590_v45 = vpop.permute.xlu1 %92  ;;  %v499_v7 = vld [vmem:[#allocation6 + $0x138] sm:$0xff] }
  0xb3   :  { %v3581_v36 = vpop.permute.xlu0 %89  ;;  %vm101_vm7 = vcmp.eq.s32.totalorder %v3590_v45, %v3530_v37  ;;  %v3642_v8 = vpack.c.bf16 %v499_v7, %v495_v5 }
  0xb4   :  { %2483 = vmatmul.mubr.msk.f32.gmra.mrb[6].mxu1 %vm97_vm3, %v3380_v60  ;;  %vm100_vm6 = vcmp.eq.s32.totalorder %v3581_v36, %v3530_v37 }
  0xb5   :  { %2612 = vmatpush1.bf16.msra.mxu1 %v2611_v12  ;;  %284 = vmatprep.mubr.f32.mxu1 %v4224_v6  ;;  %v507_v12 = vld [vmem:[#allocation6 + $0x178] sm:$0xff] }
  0xb6   :  { %2614 = vmatprep.subr.bf16.mxu1 %v2613_v14  ;;  %v3653_v14 = vpack.c.bf16 %v507_v12, %v503_v11 }
  0xb8   :  { %2484 = vmatmul.mubr.msk.f32.gmra.mrb[8].mxu1 %vm98_vm4, %v3380_v60 }
  0xb9   :  { %2616 = vmatpush1.bf16.msra.mxu1 %v2615_v21  ;;  %290 = vmatprep.mubr.f32.mxu1 %v4224_v6  ;;  %v3664_v21 = vpack.c.bf16 %v515_v19, %v511_v18 }
  0xba   :  { %2618 = vmatprep.subr.bf16.mxu1 %v2617_v23  ;;  %v510_v23 = vld [vmem:[#allocation6 + $0x190] sm:$0xff] }
  0xbb   :  { %v3672_v20 = vpack.c.bf16 %v514_v24, %v510_v23 }
  0xbc   :  { %2485 = vmatmul.mubr.msk.f32.gmra.mrb[10].mxu1 %vm99_vm5, %v3380_v60 }
  0xbd   :  { %2620 = vmatpush1.bf16.msra.mxu1 %v2619_v29  ;;  %296 = vmatprep.mubr.f32.mxu1 %v4224_v6  ;;  %v518_v29 = vld [vmem:[#allocation6 + $0x1d0] sm:$0xff] }
  0xbe   :  { %2622 = vmatprep.subr.bf16.mxu1 %v2621_v30  ;;  %v522_v30 = vld [vmem:[#allocation6 + $0x1f0] sm:$0xff] }
  0xbf   :  { %v3683_v28 = vpack.c.bf16 %v522_v30, %v518_v29 }
  0xc0   :  { %2486 = vmatmul.mubr.msk.f32.gmra.mrb[12].mxu1 %vm100_vm6, %v3380_v60 }
  0xc1   :  { %2624 = vmatpush1.bf16.msra.mxu1 %v2623_v38  ;;  %302 = vmatprep.mubr.f32.mxu1 %v4224_v6 }
  0xc2   :  { %2626 = vmatprep.subr.bf16.mxu1 %v2625_v39 }
  0xc4   :  { %2487 = vmatmul.mubr.msk.f32.gmra.mrb[14].mxu1 %vm101_vm7, %v3380_v60 }
  0xc5   :  { %2628 = vmatpush1.bf16.msra.mxu1 %v2627_v46  ;;  %373 = vmatprep.mubr.f32.mxu1 %v4224_v6 }
  0xc6   :  { %2662 = vmatprep.subr.bf16.mxu1 %v3597_v47 }
  0xc8   :  { %2488 = vmatmul.mubr.msk.f32.vlgmr.msra.gmra.mrb[16].mxu1 %vm94_vm0, %v3380_v60 }
  0xc9   :  { %2664 = vmatpush1.bf16.msra.mxu1 %v3606_v32  ;;  %379 = vmatprep.mubr.f32.mxu1 %v4224_v6 }
  0xca   :  { %2666 = vmatprep.subr.bf16.mxu1 %v3609_v41 }
  0xcc   :  { %2489 = vmatmul.mubr.msk.f32.gmra.mrb[18].mxu1 %vm95_vm1, %v3380_v60 }
  0xcd   :  { %2668 = vmatpush1.bf16.msra.mxu1 %v3617_v57  ;;  %385 = vmatprep.mubr.f32.mxu1 %v4224_v6 }
  0xce   :  { %2670 = vmatprep.subr.bf16.mxu1 %v3620_v58 }
  0xd0   :  { %2490 = vmatmul.mubr.msk.f32.gmra.mrb[20].mxu1 %vm96_vm2, %v3380_v60 }
  0xd1   :  { %2672 = vmatpush1.bf16.msra.mxu1 %v3628_v54  ;;  %391 = vmatprep.mubr.f32.mxu1 %v4224_v6 }
  0xd2   :  { %2674 = vmatprep.subr.bf16.mxu1 %v3631_v1 }
  0xd4   :  { %2491 = vmatmul.mubr.msk.f32.gmra.mrb[22].mxu1 %vm97_vm3, %v3380_v60 }
  0xd5   :  { %2676 = vmatpush1.bf16.msra.mxu1 %v3639_v62  ;;  %397 = vmatprep.mubr.f32.mxu1 %v4224_v6 }
  0xd6   :  { %2678 = vmatprep.subr.bf16.mxu1 %v3642_v8 }
  0xd8   :  { %2492 = vmatmul.mubr.msk.f32.gmra.mrb[24].mxu1 %vm98_vm4, %v3380_v60 }
  0xd9   :  { %2680 = vmatpush1.bf16.msra.mxu1 %v3650_v4  ;;  %403 = vmatprep.mubr.f32.mxu1 %v4224_v6 }
  0xda   :  { %2682 = vmatprep.subr.bf16.mxu1 %v3653_v14 }
  0xdc   :  { %2493 = vmatmul.mubr.msk.f32.gmra.mrb[26].mxu1 %vm99_vm5, %v3380_v60 }
  0xdd   :  { %2684 = vmatpush1.bf16.msra.mxu1 %v3661_v13  ;;  %409 = vmatprep.mubr.f32.mxu1 %v4224_v6 }
  0xde   :  { %2686 = vmatprep.subr.bf16.mxu1 %v3664_v21 }
  0xe0   :  { %2494 = vmatmul.mubr.msk.f32.gmra.mrb[28].mxu1 %vm100_vm6, %v3380_v60 }
  0xe1   :  { %2688 = vmatpush1.bf16.msra.mxu1 %v3672_v20  ;;  %415 = vmatprep.mubr.f32.mxu1 %v4224_v6 }
  0xe2   :  { %2690 = vmatprep.subr.bf16.mxu1 %v3675_v27 }
  0xe4   :  { %2495 = vmatmul.mubr.msk.f32.gmra.mrb[30].mxu1 %vm101_vm7, %v3380_v60  ;;  %v177_v60 = vshrl.u32 %v68_v17, 7 }
  0xe5   :  { %2692 = vmatpush1.bf16.msra.mxu1 %v3683_v28  ;;  %659 = vmatprep.mubr.f32.mxu1 %v4224_v6 }
  0xe6   :  { %2726 = vmatprep.subr.bf16.mxu1 %v3597_v47  ;;  %v178_v31 = vsub.s32 0, %v177_v60  ;;  %v182_v34 = vsub.s32 1, %v177_v60  ;;  %v186_v26 = vsub.s32 2, %v177_v60  ;;  %v190_v29 = vsub.s32 3, %v177_v60  ;;  %v455_v60 = vld [vmem:[%s4215_s2] sm:$0xff] }
  0xe8   :  { %660 = vmatmul.mubr.f32.vlgmr.msra.gmra.mrb[16].mxu1 %v3516_v52  ;;  %v179_v35 = vrot.slane %v174_v33, %v178_v31  ;;  %v183_v36 = vrot.slane %v174_v33, %v182_v34  ;;  %v3743_v30 = vrot.slane %v174_v33, %v186_v26 }
  0xe9   :  { %2728 = vmatpush1.bf16.msra.mxu1 %v3606_v32  ;;  %892 = vmatprep.mubr.f32.mxu1 %v4224_v6 }
  0xea   :  { %2730 = vmatprep.subr.bf16.mxu1 %v3609_v41 }
  0xed   :  { %2732 = vmatpush1.bf16.msra.mxu1 %v3617_v57 }
  0xee   :  { %2734 = vmatprep.subr.bf16.mxu1 %v3620_v58 }
  0xf1   :  { %2736 = vmatpush1.bf16.msra.mxu1 %v3628_v54 }
  0xf2   :  { %2738 = vmatprep.subr.bf16.mxu1 %v3631_v1 }
  0xf5   :  { %2740 = vmatpush1.bf16.msra.mxu1 %v3639_v62 }
  0xf6   :  { %2742 = vmatprep.subr.bf16.mxu1 %v3642_v8 }
  0xf9   :  { %2744 = vmatpush1.bf16.msra.mxu1 %v3650_v4 }
  0xfa   :  { %2746 = vmatprep.subr.bf16.mxu1 %v3653_v14 }
  0xfd   :  { %2748 = vmatpush1.bf16.msra.mxu1 %v3661_v13 }
  0xfe   :  { %2750 = vmatprep.subr.bf16.mxu1 %v3664_v21 }
 0x101   :  { %2752 = vmatpush1.bf16.msra.mxu1 %v3672_v20 }
 0x102   :  { %2754 = vmatprep.subr.bf16.mxu1 %v3675_v27 }
 0x105   :  { %2756 = vmatpush1.bf16.msra.mxu1 %v3683_v28 }
 0x106   :  { %2790 = vmatprep.subr.bf16.mxu1 %v3597_v47 }
 0x121   :  { %v590_v52 = vpop.f32.mrb[0].mxu0 }
 0x122   :  { %v592_v37 = vpop.f32.mrb[1].mxu0 }
 0x17b   :  { %v262_v38 = vpop.f32.mrb[0].mxu1 }
 0x17c   :  { %v263_v39 = vadd.f32 %v262_v38, %v179_v35  ;;  %v264_v40 = vpop.f32.mrb[1].mxu1 }
 0x17d   :  { %v265_v42 = vadd.f32 %v264_v40, %v183_v36 }
 0x17e   :  { %v666_v43 = vadd.f32 %v590_v52, %v263_v39  ;;  %v3745_v52 = vrot.slane %v174_v33, %v190_v29  ;;  %v934_v29 = vld [vmem:[#allocation6 + $0x40] sm:$0xff] }
 0x17f   :  { %v667_v44 = vadd.f32 %v592_v37, %v265_v42  ;;  %v268_v45 = vpop.f32.mrb[2].mxu1 }
 0x180   :  { %v3715_v46 = vadd.f32 %v268_v45, %v179_v35  ;;  %v270_v48 = vpop.f32.mrb[3].mxu1  ;;  %v670_v25 = vmul.f32 0.5, %v666_v43 }
 0x181   :  { %v3717_v49 = vadd.f32 %v270_v48, %v183_v36  ;;  %v674_v24 = vmul.f32 0.5, %v667_v44 }
 0x183   :  { %v274_v17 = vpop.f32.mrb[4].mxu1  ;;  %3246 = vtanh.f32 %v674_v24  ;;  %v935_v24 = vld [vmem:[#allocation6 + $0x48] sm:$0xff] }
 0x184   :  { %v3719_v51 = vadd.f32 %v274_v17, %v179_v35  ;;  %v276_v22 = vpop.f32.mrb[5].mxu1  ;;  %3248 = vtanh.f32 %v670_v25  ;;  %v939_v25 = vld [vmem:[#allocation6 + $0x68] sm:$0xff] }
 0x185   :  { %v3721_v50 = vadd.f32 %v276_v22, %v183_v36  ;;  %v3783_v26 = vpack.c.bf16 %v939_v25, %v935_v24  ;;  %v975_v25 = vld [vmem:[#allocation6 + $0x188] sm:$0xff] }
 0x187   :  { %v280_v53 = vpop.f32.mrb[6].mxu1 }
 0x188   :  { %v3723_v55 = vadd.f32 %v280_v53, %v179_v35  ;;  %v282_v56 = vpop.f32.mrb[7].mxu1 }
 0x189   :  { %v3725_v59 = vadd.f32 %v282_v56, %v183_v36 }
 0x18b   :  { %v286_v61 = vpop.f32.mrb[8].mxu1 }
 0x18c   :  { %v3727_v63 = vadd.f32 %v286_v61, %v179_v35  ;;  %v288_v0 = vpop.f32.mrb[9].mxu1 }
 0x18d   :  { %v3729_v2 = vadd.f32 %v288_v0, %v183_v36  ;;  %v3247_v38 = vpop.eup %3246 }
 0x18e   :  { %v676_v39 = vmul.f32 0.5, %v3247_v38  ;;  %v946_v38 = vld [vmem:[#allocation6 + $0xa0] sm:$0xff] }
 0x18f   :  { %v292_v3 = vpop.f32.mrb[10].mxu1 }
 0x190   :  { %v3731_v5 = vadd.f32 %v292_v3, %v179_v35  ;;  %v294_v7 = vpop.f32.mrb[11].mxu1  ;;  %v677_v43 = vadd.f32 0.5, %v676_v39  ;;  %v927_v3 = vld [vmem:[#allocation6 + $0x8] sm:$0xff] }
 0x191   :  { %v3733_v9 = vadd.f32 %v294_v7, %v183_v36  ;;  %v931_v7 = vld [vmem:[#allocation6 + $0x28] sm:$0xff] }
 0x192   :  { %v683_v45 = vmul.f32 %v677_v43, %v455_v60  ;;  %v951_v39 = vld [vmem:[#allocation6 + $0xc8] sm:$0xff]  ;;  %v950_v43 = vld [vmem:[#allocation6 + $0xc0] sm:$0xff] }
 0x193   :  { %v298_v10 = vpop.f32.mrb[12].mxu1  ;;  %v954_v60 = vld [vmem:[#allocation6 + $0xe0] sm:$0xff] }
 0x194   :  { %v3735_v11 = vadd.f32 %v298_v10, %v179_v35  ;;  %v300_v12 = vpop.f32.mrb[13].mxu1  ;;  %v3777_v10 = vpack.c.bf16 %v931_v7, %v927_v3  ;;  %v971_v3 = vld [vmem:[#allocation6 + $0x168] sm:$0xff] }
 0x195   :  { %v3737_v15 = vadd.f32 %v300_v12, %v183_v36  ;;  %v926_v12 = vld [vmem:[#allocation6] sm:$0xff] }
 0x196   :  { %2758 = vmatprep.subr.bf16.mxu0 %v3777_v10 }
 0x197   :  { %v304_v16 = vpop.f32.mrb[14].mxu1 }
 0x198   :  { %v3739_v18 = vadd.f32 %v304_v16, %v179_v35  ;;  %v306_v19 = vpop.f32.mrb[15].mxu1  ;;  %v930_v16 = vld [vmem:[#allocation6 + $0x20] sm:$0xff] }
 0x199   :  { %v3741_v23 = vadd.f32 %v306_v19, %v183_v36  ;;  %v3249_v36 = vpop.eup %3248  ;;  %v3779_v19 = vpack.c.bf16 %v930_v16, %v926_v12  ;;  %v966_v12 = vld [vmem:[#allocation6 + $0x140] sm:$0xff] }
 0x19a   :  { %v672_v42 = vmul.f32 0.5, %v3249_v36  ;;  %v970_v16 = vld [vmem:[#allocation6 + $0x160] sm:$0xff] }
 0x19b   :  { %4226 = vst [vmem:[#allocation10_spill] sm:$0xff] %v3741_v23  ;;  %v3809_v24 = vpack.c.bf16 %v970_v16, %v966_v12 }
 0x19c   :  { %v673_v33 = vadd.f32 0.5, %v672_v42 }
 0x1bb   :  { %v661_v37 = vpop.f32.mrb[16].mxu1 }
 0x1bc   :  { %v3205_v31 = vadd.f32 %v661_v37, %v3743_v30  ;;  %v663_v34 = vpop.f32.mrb[17].mxu1 }
 0x1bd   :  { %v3206_v35 = vadd.f32 %v663_v34, %v3745_v52 }
 0x1be   :  { %3250 = vtanh.f32 %v3205_v31  ;;  %v947_v31 = vld [vmem:[#allocation6 + $0xa8] sm:$0xff] }
 0x1bf   :  { %v679_v40 = vmul.f32 0.5, %v3206_v35  ;;  %v942_v35 = vld [vmem:[#allocation6 + $0x80] sm:$0xff] }
 0x1c0   :  { %v3791_v36 = vpack.c.bf16 %v946_v38, %v942_v35  ;;  %v983_v38 = vld [vmem:[#allocation6 + $0x1c8] sm:$0xff] }
 0x1c1   :  { %3252 = vtanh.f32 %v679_v40  ;;  %v955_v40 = vld [vmem:[#allocation6 + $0xe8] sm:$0xff] }
 0x1c2   :  { %v3795_v42 = vpack.c.bf16 %v955_v40, %v951_v39  ;;  %v987_v39 = vld [vmem:[#allocation6 + $0x1e8] sm:$0xff] }
 0x1c3   :  { %v3819_v40 = vpack.c.bf16 %v987_v39, %v983_v38 }
 0x1c8   :  { %v3251_v44 = vpop.eup %3250 }
 0x1c9   :  { %v684_v48 = vmul.f32 %v3251_v44, %v673_v33  ;;  %v3797_v33 = vpack.c.bf16 %v954_v60, %v950_v43  ;;  %v959_v44 = vld [vmem:[#allocation6 + $0x108] sm:$0xff]  ;;  %v982_v43 = vld [vmem:[#allocation6 + $0x1c0] sm:$0xff] }
 0x1ca   :  { %v986_v60 = vld [vmem:[#allocation6 + $0x1e0] sm:$0xff] }
 0x1cb   :  { %v3752_v17 = vadd.f32 %v684_v48, %v683_v45  ;;  %v3253_v22 = vpop.eup %3252  ;;  %v963_v45 = vld [vmem:[#allocation6 + $0x128] sm:$0xff] }
 0x1cc   :  { %v681_v53 = vmul.f32 0.5, %v3253_v22  ;;  %v3801_v48 = vpack.c.bf16 %v963_v45, %v959_v44  ;;  %v958_v22 = vld [vmem:[#allocation6 + $0x100] sm:$0xff]  ;;  %v3821_v44 = vpack.c.bf16 %v986_v60, %v982_v43 }
 0x1cd   :  { %3254 = vtanh.f32 %v3752_v17 }
 0x1ce   :  { %v682_v56 = vadd.f32 0.5, %v681_v53  ;;  %v962_v53 = vld [vmem:[#allocation6 + $0x120] sm:$0xff] }
 0x1d7   :  { %v3255_v61 = vpop.eup %3254 }
 0x1d8   :  { %v3755_v0 = vmul.f32 %v3255_v61, %v682_v56  ;;  %v3803_v56 = vpack.c.bf16 %v962_v53, %v958_v22  ;;  %v967_v61 = vld [vmem:[#allocation6 + $0x148] sm:$0xff] }
 0x1d9   :  { %v3807_v7 = vpack.c.bf16 %v971_v3, %v967_v61 }
 0x1da   :  { %822 = vmatmul.mubr.f32.vlgmr.msra.gmra.mrb[2].mxu0 %v3755_v0  ;;  %893 = vmatmul.mubr.f32.vlgmr.msra.gmra.mrb[18].mxu1 %v3755_v0 }
 0x1db   :  { %2792 = vmatpush1.bf16.msra.mxu1 %v3606_v32  ;;  %1054 = vmatprep.mubr.f32.mxu0 %v4224_v6 }
 0x1dc   :  { %2794 = vmatprep.subr.bf16.mxu1 %v3609_v41  ;;  %1125 = vmatprep.mubr.f32.mxu1 %v4224_v6 }
 0x1dd   :  { %2760 = vmatpush1.bf16.msra.mxu0 %v3779_v19 }
 0x1de   :  { %2762 = vmatprep.subr.bf16.mxu0 %v3783_v26 }
 0x1df   :  { %2796 = vmatpush1.bf16.msra.mxu1 %v3617_v57 }
 0x1e0   :  { %2798 = vmatprep.subr.bf16.mxu1 %v3620_v58 }
 0x1e3   :  { %2800 = vmatpush1.bf16.msra.mxu1 %v3628_v54 }
 0x1e4   :  { %2802 = vmatprep.subr.bf16.mxu1 %v3631_v1 }
 0x1e7   :  { %2804 = vmatpush1.bf16.msra.mxu1 %v3639_v62 }
 0x1e8   :  { %2806 = vmatprep.subr.bf16.mxu1 %v3642_v8 }
 0x1eb   :  { %2808 = vmatpush1.bf16.msra.mxu1 %v3650_v4 }
 0x1ec   :  { %2810 = vmatprep.subr.bf16.mxu1 %v3653_v14 }
 0x1ef   :  { %2812 = vmatpush1.bf16.msra.mxu1 %v3661_v13 }
 0x1f0   :  { %2814 = vmatprep.subr.bf16.mxu1 %v3664_v21 }
 0x1f3   :  { %2816 = vmatpush1.bf16.msra.mxu1 %v3672_v20 }
 0x1f4   :  { %2818 = vmatprep.subr.bf16.mxu1 %v3675_v27 }
 0x1f7   :  { %2820 = vmatpush1.bf16.msra.mxu1 %v3683_v28  ;;  %v938_v28 = vld [vmem:[#allocation6 + $0x60] sm:$0xff] }
 0x1f8   :  { %2854 = vmatprep.subr.bf16.mxu1 %v3597_v47  ;;  %v3785_v37 = vpack.c.bf16 %v938_v28, %v934_v29  ;;  %v943_v47 = vld [vmem:[#allocation6 + $0x88] sm:$0xff] }
 0x1f9   :  { %v3789_v34 = vpack.c.bf16 %v947_v31, %v943_v47  ;;  %v979_v29 = vld [vmem:[#allocation6 + $0x1a8] sm:$0xff]  ;;  %v974_v47 = vld [vmem:[#allocation6 + $0x180] sm:$0xff] }
 0x1fa   :  { %2764 = vmatpush1.bf16.msra.mxu0 %v3785_v37  ;;  %v3813_v28 = vpack.c.bf16 %v979_v29, %v975_v25  ;;  %v978_v31 = vld [vmem:[#allocation6 + $0x1a0] sm:$0xff] }
 0x1fb   :  { %2766 = vmatprep.subr.bf16.mxu0 %v3789_v34  ;;  %v3815_v35 = vpack.c.bf16 %v978_v31, %v974_v47 }
 0x1fe   :  { %2768 = vmatpush1.bf16.msra.mxu0 %v3791_v36 }
 0x1ff   :  { %2770 = vmatprep.subr.bf16.mxu0 %v3795_v42 }
 0x202   :  { %2772 = vmatpush1.bf16.msra.mxu0 %v3797_v33 }
 0x203   :  { %2774 = vmatprep.subr.bf16.mxu0 %v3801_v48 }
 0x206   :  { %2776 = vmatpush1.bf16.msra.mxu0 %v3803_v56 }
 0x207   :  { %2778 = vmatprep.subr.bf16.mxu0 %v3807_v7 }
 0x20a   :  { %2780 = vmatpush1.bf16.msra.mxu0 %v3809_v24 }
 0x20b   :  { %2782 = vmatprep.subr.bf16.mxu0 %v3813_v28 }
 0x20e   :  { %2784 = vmatpush1.bf16.msra.mxu0 %v3815_v35 }
 0x20f   :  { %2786 = vmatprep.subr.bf16.mxu0 %v3819_v40 }
 0x212   :  { %2788 = vmatpush1.bf16.msra.mxu0 %v3821_v44 }
 0x213   :  { %2822 = vmatprep.subr.bf16.mxu0 %v3777_v10 }
 0x2ad   :  { %v823_v45 = vpop.f32.mrb[2].mxu0  ;;  %v894_v22 = vpop.f32.mrb[18].mxu1 }
 0x2ae   :  { %v899_v53 = vadd.f32 %v823_v45, %v3715_v46  ;;  %v825_v61 = vpop.f32.mrb[3].mxu0  ;;  %v896_v3 = vpop.f32.mrb[19].mxu1  ;;  %v3207_v29 = vadd.f32 %v894_v22, %v3743_v30 }
 0x2af   :  { %v900_v12 = vadd.f32 %v825_v61, %v3717_v49  ;;  %v3208_v47 = vadd.f32 %v896_v3, %v3745_v52 }
 0x2b0   :  { %v903_v16 = vmul.f32 0.5, %v899_v53 }
 0x2b1   :  { %v907_v25 = vmul.f32 0.5, %v900_v12  ;;  %v912_v31 = vmul.f32 0.5, %v3208_v47 }
 0x2b2   :  { %3256 = vtanh.f32 %v903_v16 }
 0x2b3   :  { %3258 = vtanh.f32 %v907_v25 }
 0x2b4   :  { %3260 = vtanh.f32 %v3207_v29 }
 0x2b5   :  { %3262 = vtanh.f32 %v912_v31 }
 0x2bc   :  { %v3257_v38 = vpop.eup %3256 }
 0x2bd   :  { %v3259_v39 = vpop.eup %3258  ;;  %v905_v43 = vmul.f32 0.5, %v3257_v38 }
 0x2be   :  { %v909_v60 = vmul.f32 0.5, %v3259_v39  ;;  %v3261_v45 = vpop.eup %3260 }
 0x2bf   :  { %v906_v46 = vadd.f32 0.5, %v905_v43  ;;  %v3263_v22 = vpop.eup %3262 }
 0x2c0   :  { %v910_v6 = vadd.f32 0.5, %v909_v60  ;;  %v914_v61 = vmul.f32 0.5, %v3263_v22  ;;  %v1399_v22 = vld [vmem:[#allocation6 + $0x38] sm:$0xff] }
 0x2c1   :  { %v917_v23 = vmul.f32 %v3261_v45, %v906_v46 }
 0x2c2   :  { %v916_v49 = vmul.f32 %v910_v6, %v3752_v17  ;;  %v915_v12 = vadd.f32 0.5, %v914_v61  ;;  %v4227_v6 = vmov 0.0  }
 0x2c4   :  { %v3831_v53 = vadd.f32 %v917_v23, %v916_v49 }
 0x2c6   :  { %3264 = vtanh.f32 %v3831_v53 }
 0x2d0   :  { %v3265_v3 = vpop.eup %3264 }
 0x2d1   :  { %v3834_v16 = vmul.f32 %v3265_v3, %v915_v12  ;;  %v1394_v12 = vld [vmem:[#allocation6 + $0x10] sm:$0xff] }
 0x2d2   :  { %v1398_v3 = vld [vmem:[#allocation6 + $0x30] sm:$0xff] }
 0x2d3   :  { %1055 = vmatmul.mubr.f32.vlgmr.msra.gmra.mrb[4].mxu0 %v3834_v16  ;;  %1126 = vmatmul.mubr.f32.vlgmr.msra.gmra.mrb[20].mxu1 %v3834_v16 }
 0x2d4   :  { %2824 = vmatpush1.bf16.msra.mxu0 %v3779_v19  ;;  %2856 = vmatpush1.bf16.msra.mxu1 %v3606_v32  ;;  %v1217_v32 = vld [vmem:[#allocation6 + $0x1d0] sm:$0xff] }
 0x2d5   :  { %2826 = vmatprep.subr.bf16.mxu0 %v3783_v26  ;;  %2858 = vmatprep.subr.bf16.mxu1 %v3609_v41  ;;  %v1221_v41 = vld [vmem:[#allocation6 + $0x1f0] sm:$0xff] }
 0x2d6   :  { %1287 = vmatprep.mubr.f32.mxu0 %v4227_v6  ;;  %1358 = vmatprep.mubr.f32.mxu1 %v4227_v6 }
 0x2d8   :  { %2828 = vmatpush1.bf16.msra.mxu0 %v3785_v37  ;;  %2860 = vmatpush1.bf16.msra.mxu1 %v3617_v57  ;;  %v3870_v57 = vpack.c.bf16 %v1221_v41, %v1217_v32  ;;  %v3905_v32 = vpack.c.bf16 %v1398_v3, %v1394_v12  ;;  %v1403_v41 = vld [vmem:[#allocation6 + $0x58] sm:$0xff]  ;;  %v1438_v12 = vld [vmem:[#allocation6 + $0x170] sm:$0xff] }
 0x2d9   :  { %2830 = vmatprep.subr.bf16.mxu0 %v3789_v34  ;;  %2862 = vmatprep.subr.bf16.mxu1 %v3620_v58 }
 0x2dc   :  { %2832 = vmatpush1.bf16.msra.mxu0 %v3791_v36  ;;  %2864 = vmatpush1.bf16.msra.mxu1 %v3628_v54 }
 0x2dd   :  { %2834 = vmatprep.subr.bf16.mxu0 %v3795_v42  ;;  %2866 = vmatprep.subr.bf16.mxu1 %v3631_v1 }
 0x2e0   :  { %2836 = vmatpush1.bf16.msra.mxu0 %v3797_v33  ;;  %2868 = vmatpush1.bf16.msra.mxu1 %v3639_v62 }
 0x2e1   :  { %2838 = vmatprep.subr.bf16.mxu0 %v3801_v48  ;;  %2870 = vmatprep.subr.bf16.mxu1 %v3642_v8 }
 0x2e4   :  { %2840 = vmatpush1.bf16.msra.mxu0 %v3803_v56  ;;  %2872 = vmatpush1.bf16.msra.mxu1 %v3650_v4 }
 0x2e5   :  { %2842 = vmatprep.subr.bf16.mxu0 %v3807_v7  ;;  %2874 = vmatprep.subr.bf16.mxu1 %v3653_v14 }
 0x2e8   :  { %2844 = vmatpush1.bf16.msra.mxu0 %v3809_v24  ;;  %2876 = vmatpush1.bf16.msra.mxu1 %v3661_v13 }
 0x2e9   :  { %2846 = vmatprep.subr.bf16.mxu0 %v3813_v28  ;;  %2878 = vmatprep.subr.bf16.mxu1 %v3664_v21 }
 0x2ec   :  { %2848 = vmatpush1.bf16.msra.mxu0 %v3815_v35  ;;  %2880 = vmatpush1.bf16.msra.mxu1 %v3672_v20 }
 0x2ed   :  { %2850 = vmatprep.subr.bf16.mxu0 %v3819_v40  ;;  %2882 = vmatprep.subr.bf16.mxu1 %v3675_v27 }
 0x2f0   :  { %2852 = vmatpush1.bf16.msra.mxu0 %v3821_v44  ;;  %2884 = vmatpush1.bf16.msra.mxu1 %v3870_v57 }
 0x2f1   :  { %2886 = vmatprep.subr.bf16.mxu0 %v3777_v10 }
 0x3a6   :  { %v1056_v58 = vpop.f32.mrb[4].mxu0  ;;  %v1127_v54 = vpop.f32.mrb[20].mxu1 }
 0x3a7   :  { %v1132_v1 = vadd.f32 %v1056_v58, %v3719_v51  ;;  %v1058_v62 = vpop.f32.mrb[5].mxu0  ;;  %v1129_v8 = vpop.f32.mrb[21].mxu1  ;;  %v3209_v21 = vadd.f32 %v1127_v54, %v3743_v30  ;;  %v1407_v58 = vld [vmem:[#allocation6 + $0x78] sm:$0xff] }
 0x3a8   :  { %v1133_v4 = vadd.f32 %v1058_v62, %v3721_v50  ;;  %v3210_v20 = vadd.f32 %v1129_v8, %v3745_v52  ;;  %v3909_v54 = vpack.c.bf16 %v1407_v58, %v1403_v41  ;;  %v1406_v62 = vld [vmem:[#allocation6 + $0x70] sm:$0xff]  ;;  %v1443_v41 = vld [vmem:[#allocation6 + $0x198] sm:$0xff] }
 0x3a9   :  { %v1136_v14 = vmul.f32 0.5, %v1132_v1  ;;  %v1402_v1 = vld [vmem:[#allocation6 + $0x50] sm:$0xff]  ;;  %v1447_v58 = vld [vmem:[#allocation6 + $0x1b8] sm:$0xff] }
 0x3aa   :  { %v1140_v13 = vmul.f32 0.5, %v1133_v4  ;;  %v1145_v27 = vmul.f32 0.5, %v3210_v20  ;;  %v3911_v8 = vpack.c.bf16 %v1406_v62, %v1402_v1  ;;  %v1415_v4 = vld [vmem:[#allocation6 + $0xb8] sm:$0xff]  ;;  %v3939_v1 = vpack.c.bf16 %v1447_v58, %v1443_v41  ;;  %v1442_v62 = vld [vmem:[#allocation6 + $0x190] sm:$0xff] }
 0x3ab   :  { %3266 = vtanh.f32 %v1136_v14 }
 0x3ac   :  { %3268 = vtanh.f32 %v1140_v13  ;;  %v1410_v13 = vld [vmem:[#allocation6 + $0x90] sm:$0xff] }
 0x3ad   :  { %3270 = vtanh.f32 %v3209_v21  ;;  %v1414_v21 = vld [vmem:[#allocation6 + $0xb0] sm:$0xff] }
 0x3ae   :  { %3272 = vtanh.f32 %v1145_v27  ;;  %v3917_v20 = vpack.c.bf16 %v1414_v21, %v1410_v13  ;;  %v1419_v27 = vld [vmem:[#allocation6 + $0xd8] sm:$0xff] }
 0x3af   :  { %v1451_v13 = vld [vmem:[#allocation6 + $0x1d8] sm:$0xff] }
 0x3b0   :  { %v1455_v21 = vld [vmem:[#allocation6 + $0x1f8] sm:$0xff] }
 0x3b5   :  { %v3267_v23 = vpop.eup %3266 }
 0x3b6   :  { %v3269_v17 = vpop.eup %3268  ;;  %v1138_v25 = vmul.f32 0.5, %v3267_v23  ;;  %v1423_v23 = vld [vmem:[#allocation6 + $0xf8] sm:$0xff] }
 0x3b7   :  { %v1142_v29 = vmul.f32 0.5, %v3269_v17  ;;  %v3271_v47 = vpop.eup %3270  ;;  %v3921_v17 = vpack.c.bf16 %v1423_v23, %v1419_v27  ;;  %v3945_v27 = vpack.c.bf16 %v1455_v21, %v1451_v13 }
 0x3b8   :  { %v1139_v51 = vadd.f32 0.5, %v1138_v25  ;;  %v3273_v43 = vpop.eup %3272  ;;  %v1418_v25 = vld [vmem:[#allocation6 + $0xd0] sm:$0xff] }
 0x3b9   :  { %v1143_v31 = vadd.f32 0.5, %v1142_v29  ;;  %v1147_v60 = vmul.f32 0.5, %v3273_v43  ;;  %v1422_v29 = vld [vmem:[#allocation6 + $0xf0] sm:$0xff] }
 0x3ba   :  { %v1150_v38 = vmul.f32 %v3271_v47, %v1139_v51  ;;  %v3923_v51 = vpack.c.bf16 %v1422_v29, %v1418_v25  ;;  %v1427_v47 = vld [vmem:[#allocation6 + $0x118] sm:$0xff]  ;;  %v1430_v43 = vld [vmem:[#allocation6 + $0x130] sm:$0xff] }
 0x3bb   :  { %v1149_v50 = vmul.f32 %v1143_v31, %v3831_v53  ;;  %v1148_v46 = vadd.f32 0.5, %v1147_v60  ;;  %v1395_v53 = vld [vmem:[#allocation6 + $0x18] sm:$0xff] }
 0x3bc   :  { %v3903_v61 = vpack.c.bf16 %v1399_v22, %v1395_v53  ;;  %v1431_v31 = vld [vmem:[#allocation6 + $0x138] sm:$0xff]  ;;  %v1434_v22 = vld [vmem:[#allocation6 + $0x150] sm:$0xff] }
 0x3bd   :  { %v3878_v39 = vadd.f32 %v1150_v38, %v1149_v50  ;;  %v3927_v38 = vpack.c.bf16 %v1431_v31, %v1427_v47  ;;  %v1426_v50 = vld [vmem:[#allocation6 + $0x110] sm:$0xff]  ;;  %v3935_v3 = vpack.c.bf16 %v1438_v12, %v1434_v22 }
 0x3be   :  { %2918 = vmatprep.subr.bf16.mxu1 %v3903_v61  ;;  %v3929_v60 = vpack.c.bf16 %v1430_v43, %v1426_v50 }
 0x3bf   :  { %3274 = vtanh.f32 %v3878_v39 }
 0x3c9   :  { %v3275_v45 = vpop.eup %3274 }
 0x3ca   :  { %v3881_v49 = vmul.f32 %v3275_v45, %v1148_v46  ;;  %v1435_v46 = vld [vmem:[#allocation6 + $0x158] sm:$0xff] }
 0x3cb   :  { %v1439_v45 = vld [vmem:[#allocation6 + $0x178] sm:$0xff] }
 0x3cc   :  { %1288 = vmatmul.mubr.f32.vlgmr.msra.gmra.mrb[6].mxu0 %v3881_v49  ;;  %1359 = vmatmul.mubr.f32.vlgmr.msra.gmra.mrb[22].mxu1 %v3881_v49  ;;  %v3933_v53 = vpack.c.bf16 %v1439_v45, %v1435_v46 }
 0x3cd   :  { %2888 = vmatpush1.bf16.msra.mxu0 %v3779_v19  ;;  %1520 = vmatprep.mubr.f32.mxu0 %v4227_v6 }
 0x3ce   :  { %2890 = vmatprep.subr.bf16.mxu0 %v3783_v26  ;;  %1591 = vmatprep.mubr.f32.mxu1 %v4227_v6 }
 0x3cf   :  { %2920 = vmatpush1.bf16.msra.mxu1 %v3905_v32 }
 0x3d0   :  { %2922 = vmatprep.subr.bf16.mxu1 %v3909_v54 }
 0x3d1   :  { %2892 = vmatpush1.bf16.msra.mxu0 %v3785_v37 }
 0x3d2   :  { %2894 = vmatprep.subr.bf16.mxu0 %v3789_v34 }
 0x3d3   :  { %2924 = vmatpush1.bf16.msra.mxu1 %v3911_v8 }
 0x3d5   :  { %2896 = vmatpush1.bf16.msra.mxu0 %v3791_v36 }
 0x3d6   :  { %2898 = vmatprep.subr.bf16.mxu0 %v3795_v42 }
 0x3d9   :  { %2900 = vmatpush1.bf16.msra.mxu0 %v3797_v33 }
 0x3da   :  { %2902 = vmatprep.subr.bf16.mxu0 %v3801_v48 }
 0x3dd   :  { %2904 = vmatpush1.bf16.msra.mxu0 %v3803_v56 }
 0x3de   :  { %2906 = vmatprep.subr.bf16.mxu0 %v3807_v7 }
 0x3e1   :  { %2908 = vmatpush1.bf16.msra.mxu0 %v3809_v24 }
 0x3e2   :  { %2910 = vmatprep.subr.bf16.mxu0 %v3813_v28 }
 0x3e5   :  { %2912 = vmatpush1.bf16.msra.mxu0 %v3815_v35 }
 0x3e6   :  { %2914 = vmatprep.subr.bf16.mxu0 %v3819_v40 }
 0x3e9   :  { %2916 = vmatpush1.bf16.msra.mxu0 %v3821_v44 }
 0x3ea   :  { %2950 = vmatprep.subr.bf16.mxu0 %v3777_v10  ;;  %v1411_v10 = vld [vmem:[#allocation6 + $0x98] sm:$0xff] }
 0x3eb   :  { %v3915_v14 = vpack.c.bf16 %v1415_v4, %v1411_v10  ;;  %v1446_v10 = vld [vmem:[#allocation6 + $0x1b0] sm:$0xff] }
 0x3ec   :  { %v3941_v4 = vpack.c.bf16 %v1446_v10, %v1442_v62 }
 0x3ed   :  { %2926 = vmatprep.subr.bf16.mxu1 %v3915_v14 }
 0x3ee   :  { %2928 = vmatpush1.bf16.msra.mxu1 %v3917_v20 }
 0x3ef   :  { %2930 = vmatprep.subr.bf16.mxu1 %v3921_v17 }
 0x3f2   :  { %2932 = vmatpush1.bf16.msra.mxu1 %v3923_v51 }
 0x3f3   :  { %2934 = vmatprep.subr.bf16.mxu1 %v3927_v38 }
 0x3f6   :  { %2936 = vmatpush1.bf16.msra.mxu1 %v3929_v60 }
 0x3f7   :  { %2938 = vmatprep.subr.bf16.mxu1 %v3933_v53 }
 0x3fa   :  { %2940 = vmatpush1.bf16.msra.mxu1 %v3935_v3 }
 0x3fb   :  { %2942 = vmatprep.subr.bf16.mxu1 %v3939_v1 }
 0x3fe   :  { %2944 = vmatpush1.bf16.msra.mxu1 %v3941_v4 }
 0x3ff   :  { %2946 = vmatprep.subr.bf16.mxu1 %v3945_v27 }
 0x402   :  { %2948 = vmatpush1.bf16.msra.mxu1 %v3870_v57 }
 0x403   :  { %2982 = vmatprep.subr.bf16.mxu1 %v3903_v61 }
 0x49f   :  { %v1289_v23 = vpop.f32.mrb[6].mxu0  ;;  %v1360_v25 = vpop.f32.mrb[22].mxu1 }
 0x4a0   :  { %v1365_v29 = vadd.f32 %v1289_v23, %v3723_v55  ;;  %v1291_v47 = vpop.f32.mrb[7].mxu0  ;;  %v1362_v31 = vpop.f32.mrb[23].mxu1  ;;  %v3211_v45 = vadd.f32 %v1360_v25, %v3743_v30 }
 0x4a1   :  { %v1366_v50 = vadd.f32 %v1291_v47, %v3725_v59  ;;  %v3212_v22 = vadd.f32 %v1362_v31, %v3745_v52 }
 0x4a2   :  { %v1369_v43 = vmul.f32 0.5, %v1365_v29 }
 0x4a3   :  { %v1373_v46 = vmul.f32 0.5, %v1366_v50  ;;  %v1378_v12 = vmul.f32 0.5, %v3212_v22 }
 0x4a4   :  { %3276 = vtanh.f32 %v1369_v43 }
 0x4a5   :  { %3278 = vtanh.f32 %v1373_v46 }
 0x4a6   :  { %3280 = vtanh.f32 %v3211_v45 }
 0x4a7   :  { %3282 = vtanh.f32 %v1378_v12 }
 0x4ae   :  { %v3277_v41 = vpop.eup %3276 }
 0x4af   :  { %v3279_v58 = vpop.eup %3278  ;;  %v1371_v62 = vmul.f32 0.5, %v3277_v41 }
 0x4b0   :  { %v1375_v10 = vmul.f32 0.5, %v3279_v58  ;;  %v3281_v13 = vpop.eup %3280 }
 0x4b1   :  { %v1372_v55 = vadd.f32 0.5, %v1371_v62  ;;  %v3283_v25 = vpop.eup %3282 }
 0x4b2   :  { %v1376_v21 = vadd.f32 0.5, %v1375_v10  ;;  %v1380_v47 = vmul.f32 0.5, %v3283_v25  ;;  %v1867_v25 = vld [vmem:[#allocation6 + $0x48] sm:$0xff] }
 0x4b3   :  { %v1383_v23 = vmul.f32 %v3281_v13, %v1372_v55  ;;  %v1859_v55 = vld [vmem:[#allocation6 + $0x8] sm:$0xff] }
 0x4b4   :  { %v1382_v59 = vmul.f32 %v1376_v21, %v3878_v39  ;;  %v1381_v50 = vadd.f32 0.5, %v1380_v47  ;;  %v1863_v13 = vld [vmem:[#allocation6 + $0x28] sm:$0xff] }
 0x4b5   :  { %v3013_v21 = vpack.c.bf16 %v1863_v13, %v1859_v55  ;;  %v1871_v47 = vld [vmem:[#allocation6 + $0x68] sm:$0xff] }
 0x4b6   :  { %v3955_v29 = vadd.f32 %v1383_v23, %v1382_v59  ;;  %v1858_v23 = vld [vmem:[#allocation6] sm:$0xff]  ;;  %v1907_v55 = vld [vmem:[#allocation6 + $0x188] sm:$0xff] }
 0x4b7   :  { %v1862_v59 = vld [vmem:[#allocation6 + $0x20] sm:$0xff]  ;;  %v1911_v13 = vld [vmem:[#allocation6 + $0x1a8] sm:$0xff] }
 0x4b8   :  { %3284 = vtanh.f32 %v3955_v29 }
 0x4c2   :  { %v3285_v31 = vpop.eup %3284 }
 0x4c3   :  { %v3958_v43 = vmul.f32 %v3285_v31, %v1381_v50  ;;  %v4028_v50 = vpack.c.bf16 %v1871_v47, %v1867_v25  ;;  %v1866_v31 = vld [vmem:[#allocation6 + $0x40] sm:$0xff] }
 0x4c4   :  { %v1910_v25 = vld [vmem:[#allocation6 + $0x1a0] sm:$0xff] }
 0x4c5   :  { %1521 = vmatmul.mubr.f32.vlgmr.msra.gmra.mrb[8].mxu0 %v3958_v43  ;;  %1592 = vmatmul.mubr.f32.vlgmr.msra.gmra.mrb[24].mxu1 %v3958_v43 }
 0x4c6   :  { %2952 = vmatpush1.bf16.msra.mxu0 %v3779_v19  ;;  %2984 = vmatpush1.bf16.msra.mxu1 %v3905_v32 }
 0x4c7   :  { %2954 = vmatprep.subr.bf16.mxu0 %v3783_v26  ;;  %2986 = vmatprep.subr.bf16.mxu1 %v3909_v54 }
 0x4c8   :  { %1753 = vmatprep.mubr.f32.mxu0 %v4227_v6  ;;  %1824 = vmatprep.mubr.f32.mxu1 %v4227_v6 }
 0x4ca   :  { %2956 = vmatpush1.bf16.msra.mxu0 %v3785_v37  ;;  %2988 = vmatpush1.bf16.msra.mxu1 %v3911_v8 }
 0x4cb   :  { %2958 = vmatprep.subr.bf16.mxu0 %v3789_v34  ;;  %2990 = vmatprep.subr.bf16.mxu1 %v3915_v14 }
 0x4ce   :  { %2960 = vmatpush1.bf16.msra.mxu0 %v3791_v36  ;;  %2992 = vmatpush1.bf16.msra.mxu1 %v3917_v20 }
 0x4cf   :  { %2962 = vmatprep.subr.bf16.mxu0 %v3795_v42  ;;  %2994 = vmatprep.subr.bf16.mxu1 %v3921_v17 }
 0x4d2   :  { %2964 = vmatpush1.bf16.msra.mxu0 %v3797_v33  ;;  %2996 = vmatpush1.bf16.msra.mxu1 %v3923_v51 }
 0x4d3   :  { %2966 = vmatprep.subr.bf16.mxu0 %v3801_v48  ;;  %2998 = vmatprep.subr.bf16.mxu1 %v3927_v38 }
 0x4d6   :  { %2968 = vmatpush1.bf16.msra.mxu0 %v3803_v56  ;;  %3000 = vmatpush1.bf16.msra.mxu1 %v3929_v60 }
 0x4d7   :  { %2970 = vmatprep.subr.bf16.mxu0 %v3807_v7  ;;  %3002 = vmatprep.subr.bf16.mxu1 %v3933_v53 }
 0x4da   :  { %2972 = vmatpush1.bf16.msra.mxu0 %v3809_v24  ;;  %3004 = vmatpush1.bf16.msra.mxu1 %v3935_v3 }
 0x4db   :  { %2974 = vmatprep.subr.bf16.mxu0 %v3813_v28  ;;  %3006 = vmatprep.subr.bf16.mxu1 %v3939_v1 }
 0x4de   :  { %2976 = vmatpush1.bf16.msra.mxu0 %v3815_v35  ;;  %3008 = vmatpush1.bf16.msra.mxu1 %v3941_v4 }
 0x4df   :  { %2978 = vmatprep.subr.bf16.mxu0 %v3819_v40  ;;  %3010 = vmatprep.subr.bf16.mxu1 %v3945_v27 }
 0x4e2   :  { %2980 = vmatpush1.bf16.msra.mxu0 %v3821_v44  ;;  %3012 = vmatpush1.bf16.msra.mxu1 %v3870_v57 }
 0x4e3   :  { %3046 = vmatprep.subr.bf16.mxu1 %v3903_v61  ;;  %3014 = vmatprep.subr.bf16.mxu0 %v3013_v21 }
 0x598   :  { %v1522_v19 = vpop.f32.mrb[8].mxu0  ;;  %v1593_v26 = vpop.f32.mrb[24].mxu1 }
 0x599   :  { %v1598_v37 = vadd.f32 %v1522_v19, %v3727_v63  ;;  %v1524_v34 = vpop.f32.mrb[9].mxu0  ;;  %v1595_v36 = vpop.f32.mrb[25].mxu1  ;;  %v3213_v56 = vadd.f32 %v1593_v26, %v3743_v30  ;;  %v1870_v19 = vld [vmem:[#allocation6 + $0x60] sm:$0xff] }
 0x59a   :  { %v1599_v42 = vadd.f32 %v1524_v34, %v3729_v2  ;;  %v3214_v7 = vadd.f32 %v1595_v36, %v3745_v52  ;;  %v4030_v26 = vpack.c.bf16 %v1870_v19, %v1866_v31  ;;  %v1874_v34 = vld [vmem:[#allocation6 + $0x80] sm:$0xff]  ;;  %v1915_v31 = vld [vmem:[#allocation6 + $0x1c8] sm:$0xff] }
 0x59b   :  { %v1602_v33 = vmul.f32 0.5, %v1598_v37  ;;  %v1878_v36 = vld [vmem:[#allocation6 + $0xa0] sm:$0xff]  ;;  %v1919_v19 = vld [vmem:[#allocation6 + $0x1e8] sm:$0xff] }
 0x59c   :  { %v1606_v48 = vmul.f32 0.5, %v1599_v42  ;;  %v1611_v24 = vmul.f32 0.5, %v3214_v7  ;;  %v4036_v42 = vpack.c.bf16 %v1878_v36, %v1874_v34  ;;  %v1882_v7 = vld [vmem:[#allocation6 + $0xc0] sm:$0xff] }
 0x59d   :  { %3286 = vtanh.f32 %v1602_v33  ;;  %v1883_v33 = vld [vmem:[#allocation6 + $0xc8] sm:$0xff]  ;;  %v1918_v34 = vld [vmem:[#allocation6 + $0x1e0] sm:$0xff] }
 0x59e   :  { %3288 = vtanh.f32 %v1606_v48  ;;  %v1887_v48 = vld [vmem:[#allocation6 + $0xe8] sm:$0xff] }
 0x59f   :  { %3290 = vtanh.f32 %v3213_v56  ;;  %v4040_v56 = vpack.c.bf16 %v1887_v48, %v1883_v33 }
 0x5a0   :  { %3292 = vtanh.f32 %v1611_v24  ;;  %v1886_v24 = vld [vmem:[#allocation6 + $0xe0] sm:$0xff] }
 0x5a7   :  { %v3287_v28 = vpop.eup %3286 }
 0x5a8   :  { %v3289_v35 = vpop.eup %3288  ;;  %v1604_v40 = vmul.f32 0.5, %v3287_v28  ;;  %v4042_v28 = vpack.c.bf16 %v1886_v24, %v1882_v7 }
 0x5a9   :  { %v1608_v44 = vmul.f32 0.5, %v3289_v35  ;;  %v3291_v39 = vpop.eup %3290  ;;  %v1891_v35 = vld [vmem:[#allocation6 + $0x108] sm:$0xff] }
 0x5aa   :  { %v1605_v63 = vadd.f32 0.5, %v1604_v40  ;;  %v3293_v12 = vpop.eup %3292  ;;  %v1895_v40 = vld [vmem:[#allocation6 + $0x128] sm:$0xff] }
 0x5ab   :  { %v1609_v46 = vadd.f32 0.5, %v1608_v44  ;;  %v1613_v41 = vmul.f32 0.5, %v3293_v12  ;;  %v4046_v44 = vpack.c.bf16 %v1895_v40, %v1891_v35 }
 0x5ac   :  { %v1616_v45 = vmul.f32 %v3291_v39, %v1605_v63  ;;  %v1890_v63 = vld [vmem:[#allocation6 + $0x100] sm:$0xff] }
 0x5ad   :  { %v1615_v2 = vmul.f32 %v1609_v46, %v3955_v29  ;;  %v1614_v58 = vadd.f32 0.5, %v1613_v41  ;;  %v4025_v29 = vpack.c.bf16 %v1862_v59, %v1858_v23  ;;  %v1894_v39 = vld [vmem:[#allocation6 + $0x120] sm:$0xff]  ;;  %v4058_v23 = vpack.c.bf16 %v1911_v13, %v1907_v55 }
 0x5ae   :  { %v4048_v46 = vpack.c.bf16 %v1894_v39, %v1890_v63  ;;  %v1898_v41 = vld [vmem:[#allocation6 + $0x140] sm:$0xff] }
 0x5af   :  { %v4000_v22 = vadd.f32 %v1616_v45, %v1615_v2  ;;  %v1899_v45 = vld [vmem:[#allocation6 + $0x148] sm:$0xff]  ;;  %v1906_v59 = vld [vmem:[#allocation6 + $0x180] sm:$0xff] }
 0x5b0   :  { %v1903_v2 = vld [vmem:[#allocation6 + $0x168] sm:$0xff]  ;;  %v4060_v47 = vpack.c.bf16 %v1910_v25, %v1906_v59 }
 0x5b1   :  { %3294 = vtanh.f32 %v4000_v22  ;;  %v4052_v12 = vpack.c.bf16 %v1903_v2, %v1899_v45 }
 0x5bb   :  { %v3295_v62 = vpop.eup %3294 }
 0x5bc   :  { %v4003_v10 = vmul.f32 %v3295_v62, %v1614_v58  ;;  %v1902_v58 = vld [vmem:[#allocation6 + $0x160] sm:$0xff] }
 0x5bd   :  { %v4054_v62 = vpack.c.bf16 %v1902_v58, %v1898_v41 }
 0x5be   :  { %1754 = vmatmul.mubr.f32.vlgmr.msra.gmra.mrb[10].mxu0 %v4003_v10  ;;  %1825 = vmatmul.mubr.f32.vlgmr.msra.gmra.mrb[26].mxu1 %v4003_v10 }
 0x5bf   :  { %3048 = vmatpush1.bf16.msra.mxu1 %v3905_v32  ;;  %1986 = vmatprep.mubr.f32.mxu0 %v4227_v6 }
 0x5c0   :  { %3050 = vmatprep.subr.bf16.mxu1 %v3909_v54  ;;  %2057 = vmatprep.mubr.f32.mxu1 %v4227_v6 }
 0x5c1   :  { %3016 = vmatpush1.bf16.msra.mxu0 %v4025_v29 }
 0x5c2   :  { %3018 = vmatprep.subr.bf16.mxu0 %v4028_v50 }
 0x5c3   :  { %3052 = vmatpush1.bf16.msra.mxu1 %v3911_v8 }
 0x5c4   :  { %3054 = vmatprep.subr.bf16.mxu1 %v3915_v14 }
 0x5c5   :  { %3020 = vmatpush1.bf16.msra.mxu0 %v4030_v26 }
 0x5c7   :  { %3056 = vmatpush1.bf16.msra.mxu1 %v3917_v20 }
 0x5c8   :  { %3058 = vmatprep.subr.bf16.mxu1 %v3921_v17 }
 0x5cb   :  { %3060 = vmatpush1.bf16.msra.mxu1 %v3923_v51 }
 0x5cc   :  { %3062 = vmatprep.subr.bf16.mxu1 %v3927_v38 }
 0x5cf   :  { %3064 = vmatpush1.bf16.msra.mxu1 %v3929_v60 }
 0x5d0   :  { %3066 = vmatprep.subr.bf16.mxu1 %v3933_v53 }
 0x5d3   :  { %3068 = vmatpush1.bf16.msra.mxu1 %v3935_v3 }
 0x5d4   :  { %3070 = vmatprep.subr.bf16.mxu1 %v3939_v1 }
 0x5d7   :  { %3072 = vmatpush1.bf16.msra.mxu1 %v3941_v4 }
 0x5d8   :  { %3074 = vmatprep.subr.bf16.mxu1 %v3945_v27 }
 0x5db   :  { %3076 = vmatpush1.bf16.msra.mxu1 %v3870_v57  ;;  %v1875_v57 = vld [vmem:[#allocation6 + $0x88] sm:$0xff] }
 0x5dc   :  { %3110 = vmatprep.subr.bf16.mxu1 %v3903_v61  ;;  %v1879_v61 = vld [vmem:[#allocation6 + $0xa8] sm:$0xff] }
 0x5dd   :  { %v4034_v37 = vpack.c.bf16 %v1879_v61, %v1875_v57  ;;  %v4064_v57 = vpack.c.bf16 %v1919_v19, %v1915_v31  ;;  %v1914_v61 = vld [vmem:[#allocation6 + $0x1c0] sm:$0xff] }
 0x5de   :  { %v4066_v36 = vpack.c.bf16 %v1918_v34, %v1914_v61 }
 0x5df   :  { %3022 = vmatprep.subr.bf16.mxu0 %v4034_v37 }
 0x5e0   :  { %3024 = vmatpush1.bf16.msra.mxu0 %v4036_v42 }
 0x5e1   :  { %3026 = vmatprep.subr.bf16.mxu0 %v4040_v56 }
 0x5e4   :  { %3028 = vmatpush1.bf16.msra.mxu0 %v4042_v28 }
 0x5e5   :  { %3030 = vmatprep.subr.bf16.mxu0 %v4046_v44 }
 0x5e8   :  { %3032 = vmatpush1.bf16.msra.mxu0 %v4048_v46 }
 0x5e9   :  { %3034 = vmatprep.subr.bf16.mxu0 %v4052_v12 }
 0x5ec   :  { %3036 = vmatpush1.bf16.msra.mxu0 %v4054_v62 }
 0x5ed   :  { %3038 = vmatprep.subr.bf16.mxu0 %v4058_v23 }
 0x5f0   :  { %3040 = vmatpush1.bf16.msra.mxu0 %v4060_v47 }
 0x5f1   :  { %3042 = vmatprep.subr.bf16.mxu0 %v4064_v57 }
 0x5f4   :  { %3044 = vmatpush1.bf16.msra.mxu0 %v4066_v36 }
 0x5f5   :  { %3078 = vmatprep.subr.bf16.mxu0 %v3013_v21 }
 0x691   :  { %v1755_v33 = vpop.f32.mrb[10].mxu0  ;;  %v1826_v48 = vpop.f32.mrb[26].mxu1 }
 0x692   :  { %v1831_v7 = vadd.f32 %v1755_v33, %v3731_v5  ;;  %v1757_v24 = vpop.f32.mrb[11].mxu0  ;;  %v1828_v35 = vpop.f32.mrb[27].mxu1  ;;  %v3215_v45 = vadd.f32 %v1826_v48, %v3743_v30 }
 0x693   :  { %v1832_v40 = vadd.f32 %v1757_v24, %v3733_v9  ;;  %v3216_v2 = vadd.f32 %v1828_v35, %v3745_v52 }
 0x694   :  { %v1835_v63 = vmul.f32 0.5, %v1831_v7 }
 0x695   :  { %v1839_v39 = vmul.f32 0.5, %v1832_v40  ;;  %v1844_v41 = vmul.f32 0.5, %v3216_v2  ;;  %v2334_v40 = vld [vmem:[%s4219_s6 + $0x20] sm:$0xff]  ;;  %v2337_v2 = vld [vmem:[%s4219_s6 + $0x38] sm:$0xff] }
 0x696   :  { %3296 = vtanh.f32 %v1835_v63  ;;  %v2335_v63 = vld [vmem:[%s4219_s6 + $0x28] sm:$0xff] }
 0x697   :  { %3298 = vtanh.f32 %v1839_v39  ;;  %v3149_v39 = vpack.c.bf16 %v2335_v63, %v2334_v40 }
 0x698   :  { %3300 = vtanh.f32 %v3215_v45  ;;  %v2336_v45 = vld [vmem:[%s4219_s6 + $0x30] sm:$0xff] }
 0x699   :  { %3302 = vtanh.f32 %v1844_v41  ;;  %v3153_v41 = vpack.c.bf16 %v2337_v2, %v2336_v45 }
 0x6a0   :  { %v3297_v58 = vpop.eup %3296 }
 0x6a1   :  { %v3299_v21 = vpop.eup %3298  ;;  %v1837_v55 = vmul.f32 0.5, %v3297_v58  ;;  %v2338_v58 = vld [vmem:[%s4219_s6 + $0x40] sm:$0xff] }
 0x6a2   :  { %v1841_v13 = vmul.f32 0.5, %v3299_v21  ;;  %v3301_v59 = vpop.eup %3300 }
 0x6a3   :  { %v1838_v5 = vadd.f32 0.5, %v1837_v55  ;;  %v3303_v61 = vpop.eup %3302  ;;  %v2340_v55 = vld [vmem:[%s4219_s6 + $0x50] sm:$0xff] }
 0x6a4   :  { %v1842_v25 = vadd.f32 0.5, %v1841_v13  ;;  %v1846_v34 = vmul.f32 0.5, %v3303_v61  ;;  %v2341_v13 = vld [vmem:[%s4219_s6 + $0x58] sm:$0xff] }
 0x6a5   :  { %v1849_v31 = vmul.f32 %v3301_v59, %v1838_v5  ;;  %v3161_v5 = vpack.c.bf16 %v2341_v13, %v2340_v55  ;;  %v2342_v59 = vld [vmem:[%s4219_s6 + $0x60] sm:$0xff] }
 0x6a6   :  { %v1848_v9 = vmul.f32 %v1842_v25, %v4000_v22  ;;  %v1847_v33 = vadd.f32 0.5, %v1846_v34  ;;  %v2343_v25 = vld [vmem:[%s4219_s6 + $0x68] sm:$0xff] }
 0x6a8   :  { %v4075_v19 = vadd.f32 %v1849_v31, %v1848_v9  ;;  %v3165_v31 = vpack.c.bf16 %v2343_v25, %v2342_v59  ;;  %v2344_v9 = vld [vmem:[%s4219_s6 + $0x70] sm:$0xff] }
 0x6aa   :  { %3304 = vtanh.f32 %v4075_v19 }
 0x6b4   :  { %v3305_v48 = vpop.eup %3304 }
 0x6b5   :  { %v4078_v7 = vmul.f32 %v3305_v48, %v1847_v33 }
 0x6b7   :  { %1987 = vmatmul.mubr.f32.vlgmr.msra.gmra.mrb[12].mxu0 %v4078_v7  ;;  %2058 = vmatmul.mubr.f32.vlgmr.msra.gmra.mrb[28].mxu1 %v4078_v7 }
 0x6b8   :  { %3080 = vmatpush1.bf16.msra.mxu0 %v4025_v29  ;;  %3112 = vmatpush1.bf16.msra.mxu1 %v3905_v32  ;;  %v2153_v32 = vld [vmem:[#allocation6 + $0x1f0] sm:$0xff] }
 0x6b9   :  { %3082 = vmatprep.subr.bf16.mxu0 %v4028_v50  ;;  %3114 = vmatprep.subr.bf16.mxu1 %v3909_v54 }
 0x6ba   :  { %2219 = vmatprep.mubr.f32.mxu0 %v4227_v6  ;;  %2290 = vmatprep.mubr.f32.mxu1 %v4227_v6  ;;  %v2149_v6 = vld [vmem:[#allocation6 + $0x1d0] sm:$0xff] }
 0x6bb   :  { %v3139_v54 = vpack.c.bf16 %v2153_v32, %v2149_v6 }
 0x6bc   :  { %3084 = vmatpush1.bf16.msra.mxu0 %v4030_v26  ;;  %3116 = vmatpush1.bf16.msra.mxu1 %v3911_v8  ;;  %v2330_v8 = vld [vmem:[%s4219_s6] sm:$0xff] }
 0x6bd   :  { %3086 = vmatprep.subr.bf16.mxu0 %v4034_v37  ;;  %3118 = vmatprep.subr.bf16.mxu1 %v3915_v14  ;;  %v2331_v14 = vld [vmem:[%s4219_s6 + $0x8] sm:$0xff] }
 0x6c0   :  { %3088 = vmatpush1.bf16.msra.mxu0 %v4036_v42  ;;  %3120 = vmatpush1.bf16.msra.mxu1 %v3917_v20  ;;  %v3141_v20 = vpack.c.bf16 %v2331_v14, %v2330_v8 }
 0x6c1   :  { %3090 = vmatprep.subr.bf16.mxu0 %v4040_v56  ;;  %3122 = vmatprep.subr.bf16.mxu1 %v3921_v17 }
 0x6c4   :  { %3092 = vmatpush1.bf16.msra.mxu0 %v4042_v28  ;;  %3124 = vmatpush1.bf16.msra.mxu1 %v3923_v51 }
 0x6c5   :  { %3094 = vmatprep.subr.bf16.mxu0 %v4046_v44  ;;  %3126 = vmatprep.subr.bf16.mxu1 %v3927_v38 }
 0x6c8   :  { %3096 = vmatpush1.bf16.msra.mxu0 %v4048_v46  ;;  %3128 = vmatpush1.bf16.msra.mxu1 %v3929_v60 }
 0x6c9   :  { %3098 = vmatprep.subr.bf16.mxu0 %v4052_v12  ;;  %3130 = vmatprep.subr.bf16.mxu1 %v3933_v53 }
 0x6cc   :  { %3100 = vmatpush1.bf16.msra.mxu0 %v4054_v62  ;;  %3132 = vmatpush1.bf16.msra.mxu1 %v3935_v3 }
 0x6cd   :  { %3102 = vmatprep.subr.bf16.mxu0 %v4058_v23  ;;  %3134 = vmatprep.subr.bf16.mxu1 %v3939_v1  ;;  %v2332_v23 = vld [vmem:[%s4219_s6 + $0x10] sm:$0xff] }
 0x6d0   :  { %3104 = vmatpush1.bf16.msra.mxu0 %v4060_v47  ;;  %3136 = vmatpush1.bf16.msra.mxu1 %v3941_v4  ;;  %v2333_v47 = vld [vmem:[%s4219_s6 + $0x18] sm:$0xff] }
 0x6d1   :  { %3106 = vmatprep.subr.bf16.mxu0 %v4064_v57  ;;  %3138 = vmatprep.subr.bf16.mxu1 %v3945_v27  ;;  %v3145_v35 = vpack.c.bf16 %v2333_v47, %v2332_v23 }
 0x6d4   :  { %3108 = vmatpush1.bf16.msra.mxu0 %v4066_v36  ;;  %3140 = vmatpush1.bf16.msra.mxu1 %v3139_v54  ;;  %v4228_v54 = vld [vmem:[#allocation10_spill] sm:$0xff] }
 0x6d5   :  { %3142 = vmatprep.subr.bf16.mxu0 %v3141_v20 }
 0x78a   :  { %v1988_v17 = vpop.f32.mrb[12].mxu0  ;;  %v2059_v51 = vpop.f32.mrb[28].mxu1 }
 0x78b   :  { %v2064_v38 = vadd.f32 %v1988_v17, %v3735_v11  ;;  %v1990_v60 = vpop.f32.mrb[13].mxu0  ;;  %v2061_v53 = vpop.f32.mrb[29].mxu1  ;;  %v3217_v27 = vadd.f32 %v2059_v51, %v3743_v30 }
 0x78c   :  { %v2065_v3 = vadd.f32 %v1990_v60, %v3737_v15  ;;  %v3218_v22 = vadd.f32 %v2061_v53, %v3745_v52 }
 0x78d   :  { %v2068_v1 = vmul.f32 0.5, %v2064_v38 }
 0x78e   :  { %v2072_v4 = vmul.f32 0.5, %v2065_v3  ;;  %v2077_v29 = vmul.f32 0.5, %v3218_v22 }
 0x78f   :  { %3306 = vtanh.f32 %v2068_v1 }
 0x790   :  { %3308 = vtanh.f32 %v2072_v4  ;;  %v2496_v4 = vld [vmem:[%s4220_s7] ss:$0 sm:$0xff] }
 0x791   :  { %3310 = vtanh.f32 %v3217_v27 }
 0x792   :  { %3312 = vtanh.f32 %v2077_v29 }
 0x799   :  { %v3307_v50 = vpop.eup %3306 }
 0x79a   :  { %v3309_v26 = vpop.eup %3308  ;;  %v2070_v37 = vmul.f32 0.5, %v3307_v50 }
 0x79b   :  { %v2074_v42 = vmul.f32 0.5, %v3309_v26  ;;  %v3311_v56 = vpop.eup %3310 }
 0x79c   :  { %v2071_v11 = vadd.f32 0.5, %v2070_v37  ;;  %v3313_v12 = vpop.eup %3312 }
 0x79d   :  { %v2075_v28 = vadd.f32 0.5, %v2074_v42  ;;  %v2079_v62 = vmul.f32 0.5, %v3313_v12 }
 0x79e   :  { %v2082_v44 = vmul.f32 %v3311_v56, %v2071_v11 }
 0x79f   :  { %v2081_v15 = vmul.f32 %v2075_v28, %v4075_v19  ;;  %v2080_v57 = vadd.f32 0.5, %v2079_v62  ;;  %v2345_v19 = vld [vmem:[%s4219_s6 + $0x78] sm:$0xff] }
 0x7a0   :  { %v3169_v61 = vpack.c.bf16 %v2345_v19, %v2344_v9 }
 0x7a1   :  { %v4124_v46 = vadd.f32 %v2082_v44, %v2081_v15 }
 0x7a3   :  { %3314 = vtanh.f32 %v4124_v46 }
 0x7ad   :  { %v3315_v36 = vpop.eup %3314 }
 0x7ae   :  { %v2085_v24 = vmul.f32 %v3315_v36, %v2080_v57 }
 0x7b0   :  { %2220 = vmatmul.mubr.f32.vlgmr.msra.gmra.mrb[14].mxu0 %v2085_v24  ;;  %2291 = vmatmul.mubr.f32.vlgmr.msra.gmra.mrb[30].mxu1 %v2085_v24 }
 0x7b1   :  { %3144 = vmatpush3.bf16.msra.mxu0 %v3141_v20  ;;  %2553 = vmatprep.mubr.f32.mxu0 %v3755_v0  ;;  %v2339_v0 = vld [vmem:[%s4219_s6 + $0x48] sm:$0xff] }
 0x7b2   :  { %3146 = vmatprep.subr.bf16.mxu0 %v3145_v35  ;;  %v3157_v21 = vpack.c.bf16 %v2339_v0, %v2338_v58 }
 0x7b5   :  { %3148 = vmatpush3.bf16.msra.mxu0 %v3145_v35 }
 0x7b6   :  { %3150 = vmatprep.subr.bf16.mxu0 %v3149_v39 }
 0x7b9   :  { %3152 = vmatpush3.bf16.msra.mxu0 %v3149_v39 }
 0x7ba   :  { %3154 = vmatprep.subr.bf16.mxu0 %v3153_v41 }
 0x7bd   :  { %3156 = vmatpush3.bf16.msra.mxu0 %v3153_v41 }
 0x7be   :  { %3158 = vmatprep.subr.bf16.mxu0 %v3157_v21 }
 0x7c1   :  { %3160 = vmatpush3.bf16.msra.mxu0 %v3157_v21 }
 0x7c2   :  { %3162 = vmatprep.subr.bf16.mxu0 %v3161_v5 }
 0x7c5   :  { %3164 = vmatpush3.bf16.msra.mxu0 %v3161_v5 }
 0x7c6   :  { %3166 = vmatprep.subr.bf16.mxu0 %v3165_v31 }
 0x7c9   :  { %3168 = vmatpush3.bf16.msra.mxu0 %v3165_v31 }
 0x7ca   :  { %3170 = vmatprep.subr.bf16.mxu0 %v3169_v61 }
 0x7cd   :  { %3172 = vmatpush3.bf16.msra.mxu0 %v3169_v61 }
 0x7d0   :  { %2554 = vmatmul.mubr.f32.vlgmr.msra.gmra.mrb[16].mxu0 %v3834_v16 }
 0x7d1   :  { %2556 = vmatprep.mubr.f32.mxu0 %v3881_v49 }
 0x7d4   :  { %2557 = vmatmul.mubr.f32.gmra.mrb[18].mxu0 %v3958_v43 }
 0x7d5   :  { %2559 = vmatprep.mubr.f32.mxu0 %v4003_v10 }
 0x7d8   :  { %2560 = vmatmul.mubr.f32.gmra.mrb[20].mxu0 %v4078_v7 }
 0x7d9   :  { %2562 = vmatprep.mubr.f32.mxu0 %v2085_v24 }
 0x883   :  { %v2221_v34 = vpop.f32.mrb[14].mxu0  ;;  %v2292_v33 = vpop.f32.mrb[30].mxu1 }
 0x884   :  { %v2297_v48 = vadd.f32 %v2221_v34, %v3739_v18  ;;  %v2223_v6 = vpop.f32.mrb[15].mxu0  ;;  %v2294_v32 = vpop.f32.mrb[31].mxu1  ;;  %v3219_v16 = vadd.f32 %v2292_v33, %v3743_v30 }
 0x885   :  { %v2298_v8 = vadd.f32 %v2223_v6, %v4228_v54  ;;  %v3220_v49 = vadd.f32 %v2294_v32, %v3745_v52 }
 0x886   :  { %v2301_v14 = vmul.f32 0.5, %v2297_v48 }
 0x887   :  { %v2305_v20 = vmul.f32 0.5, %v2298_v8  ;;  %v2310_v43 = vmul.f32 0.5, %v3220_v49 }
 0x888   :  { %3316 = vtanh.f32 %v2301_v14 }
 0x889   :  { %3318 = vtanh.f32 %v2305_v20 }
 0x88a   :  { %3320 = vtanh.f32 %v3219_v16 }
 0x88b   :  { %3322 = vtanh.f32 %v2310_v43 }
 0x892   :  { %v3317_v10 = vpop.eup %3316 }
 0x893   :  { %v3319_v7 = vpop.eup %3318  ;;  %v2303_v17 = vmul.f32 0.5, %v3317_v10 }
 0x894   :  { %v2307_v51 = vmul.f32 0.5, %v3319_v7  ;;  %v3321_v38 = vpop.eup %3320 }
 0x895   :  { %v2304_v18 = vadd.f32 0.5, %v2303_v17  ;;  %v3323_v30 = vpop.eup %3322 }
 0x896   :  { %v2308_v60 = vadd.f32 0.5, %v2307_v51  ;;  %v2312_v52 = vmul.f32 0.5, %v3323_v30 }
 0x897   :  { %v2315_v53 = vmul.f32 %v3321_v38, %v2304_v18 }
 0x898   :  { %v2314_v3 = vmul.f32 %v2308_v60, %v4124_v46  ;;  %v2313_v50 = vadd.f32 0.5, %v2312_v52 }
 0x89a   :  { %v2316_v1 = vadd.f32 %v2315_v53, %v2314_v3 }
 0x89c   :  { %3324 = vtanh.f32 %v2316_v1  ;;  %2321 = vst [vmem:[%s4223_s10] sm:$0xff] %v2316_v1 }
 0x8a3   :  { %v2555_v27 = vpop.f32.mrb[16].mxu0 }
 0x8a4   :  { %v2425_v22 = vadd.f32 %v2555_v27, %v2496_v4  ;;  %v2419_v29 = vpop.f32.mrb[17].mxu0 }
 0x8a5   :  { %v2420_v26 = vadd.f32 %v2496_v4, %v2419_v29 }
 0x8a6   :  { %v3325_v37 = vpop.eup %3324  ;;  %2459 = vst [vmem:[%s4221_s8 + $0x8] sm:$0xff] %v2425_v22 }
 0x8a7   :  { %2458 = vst [vmem:[%s4221_s8] sm:$0xff] %v2420_v26  ;;  %v2558_v42 = vpop.f32.mrb[18].mxu0  ;;  %v2318_v11 = vmul.f32 %v3325_v37, %v2313_v50 }
 0x8a8   :  { %v2435_v56 = vadd.f32 %v2558_v42, %v2496_v4  ;;  %v2429_v28 = vpop.f32.mrb[19].mxu0 }
 0x8a9   :  { %v2430_v44 = vadd.f32 %v2496_v4, %v2429_v28  ;;  %2320 = vst [vmem:[%s4222_s9] sm:$0xff] %v2318_v11  ;;  %2563 = vmatmul.mubr.f32.gmra.mrb[22].mxu0 %v2318_v11 }
 0x8aa   :  { %2461 = vst [vmem:[%s4221_s8 + $0x18] sm:$0xff] %v2435_v56 }
 0x8ab   :  { %2460 = vst [vmem:[%s4221_s8 + $0x10] sm:$0xff] %v2430_v44  ;;  %v2561_v15 = vpop.f32.mrb[20].mxu0 }
 0x8ac   :  { %v2445_v46 = vadd.f32 %v2561_v15, %v2496_v4  ;;  %v2439_v12 = vpop.f32.mrb[21].mxu0 }
 0x8ad   :  { %v2440_v62 = vadd.f32 %v2496_v4, %v2439_v12 }
 0x8ae   :  { %2463 = vst [vmem:[%s4221_s8 + $0x28] sm:$0xff] %v2445_v46 }
 0x8af   :  { %2462 = vst [vmem:[%s4221_s8 + $0x20] sm:$0xff] %v2440_v62 }
 0x97c   :  { %v2564_v23 = vpop.f32.mrb[22].mxu0 }
 0x97d   :  { %v2455_v47 = vadd.f32 %v2564_v23, %v2496_v4  ;;  %v2449_v57 = vpop.f32.mrb[23].mxu0 }
 0x97e   :  { %v2450_v36 = vadd.f32 %v2496_v4, %v2449_v57 }
 0x97f   :  { %2465 = vst [vmem:[%s4221_s8 + $0x38] sm:$0xff] %v2455_v47 }
 0x980   :  { %2464 = vst [vmem:[%s4221_s8 + $0x30] sm:$0xff] %v2450_v36 }
 0x981   :  { %2478 = vsyncpa [#allocation5], 1 }
 0x982   :  { %2479 = vsyncpa [#allocation7], 1 }

</bundles_post_ra>
